<compile_context>
chip_gen: v6e
topology: v6e:2x2x1
jax: 0.10.0
libtpu: 0.0.40
codegen_flags: <defaults>
</compile_context>

<pallas_src>
import math

import numpy as np
import jax
import jax.numpy as jnp
from jax.experimental import pallas as pl
from jax.experimental.pallas import tpu as pltpu

GROUPS = 8
EPS = 1e-5


# ----------------------------------------------------------------------------
# Kernel (one grid step = one sample, everything lane-dense in VMEM)
# ----------------------------------------------------------------------------

def _gn_relu(acc, gamma_col, beta_col, gsel, gsel_t, inv_cnt):
    """GroupNorm(G) + ReLU on a lane-dense (H, W*Cout) f32 tile (one sample)."""
    colsum = jnp.sum(acc, axis=0, keepdims=True)                              # (1, WC)
    mean_g = jnp.dot(colsum, gsel, preferred_element_type=jnp.float32) * inv_cnt   # (1, G)
    mean_c = jnp.dot(mean_g, gsel_t, preferred_element_type=jnp.float32)           # (1, WC)
    d = acc - mean_c
    sqsum = jnp.sum(d * d, axis=0, keepdims=True)                             # (1, WC)
    var_g = jnp.dot(sqsum, gsel, preferred_element_type=jnp.float32) * inv_cnt     # (1, G)
    inv_c = jnp.dot(jax.lax.rsqrt(var_g + EPS), gsel_t,
                    preferred_element_type=jnp.float32)                       # (1, WC)
    y = d * inv_c * gamma_col + beta_col
    return jnp.maximum(y, 0.0)


def convblock_kernel(x_ref, w1_ref, b1_ref, g1_ref, be1_ref,
                     w2_ref, b2_ref, g2_ref, be2_ref,
                     gsel_ref, gselt_ref, o_ref):
    H, WC = o_ref.shape[1], o_ref.shape[2]          # H, W*Cout (lane-dense minor dim)
    groups = gsel_ref.shape[1]
    inv_cnt = float(groups) / float(H * WC)         # 1 / (H * W * (Cout/groups))
    cdt = w1_ref.dtype                              # MXU operand dtype (bf16)

    gsel = gsel_ref[...]                            # (WC, G) 0/1 channel->group selector
    gsel_t = gselt_ref[...]                         # (G, WC)

    # ---- conv1: 3 banded dots (one per kernel row); height halo = 2 zero rows
    x = x_ref[0].astype(cdt)                        # (H, W*Cin)
    zx = jnp.zeros((1, x.shape[1]), cdt)
    xh = jnp.concatenate([zx, x, zx], axis=0)       # (H+2, W*Cin)

    acc = jnp.zeros((H, WC), jnp.float32)
    for kh in range(3):
        acc = acc + jnp.dot(xh[kh:kh + H, :], w1_ref[kh],
                            preferred_element_type=jnp.float32)
    acc = acc + b1_ref[...]                         # (1, WC) broadcast over rows
    h1 = _gn_relu(acc, g1_ref[...], be1_ref[...], gsel, gsel_t, inv_cnt)

    # ---- conv2 ---------------------------------------------------------------
    z1 = jnp.zeros((1, WC), cdt)
    h1h = jnp.concatenate([z1, h1.astype(cdt), z1], axis=0)   # (H+2, W*Cout)

    acc2 = jnp.zeros((H, WC), jnp.float32)
    for kh in range(3):
        acc2 = acc2 + jnp.dot(h1h[kh:kh + H, :], w2_ref[kh],
                              preferred_element_type=jnp.float32)
    acc2 = acc2 + b2_ref[...]
    h2 = _gn_relu(acc2, g2_ref[...], be2_ref[...], gsel, gsel_t, inv_cnt)

    o_ref[0] = h2                                   # full-lane, unmasked store


# ----------------------------------------------------------------------------
# Host-side weight relayout (hoisted out of the jitted forward)
# ----------------------------------------------------------------------------

def prepare_params(raw, spatial_w, groups=GROUPS, compute_dtype=jnp.bfloat16):
    """Unroll conv weights over the output width into banded matrices.

    For each kernel row kh, BW_kh[(w+kw-1)*Cin + ci, w*Cout + co] = W[co, ci, kh, kw]
    for valid 0 <= w+kw-1 < W (width padding baked in as zero blocks).  The conv
    then becomes 3 lane-dense MXU dots per layer.  Per-channel bias/gamma/beta
    are tiled once to (1, W*Cout) column vectors.
    """
    W = int(spatial_w)

    def banded(w_oihw):
        w = np.asarray(jax.device_get(w_oihw), np.float32)      # (Cout, Cin, 3, 3)
        co, ci = w.shape[0], w.shape[1]
        wt = np.transpose(w, (2, 3, 1, 0))                       # (kh, kw, Cin, Cout)
        bw = np.zeros((3, W * ci, W * co), np.float32)
        for kh in range(3):
            for kw in range(3):
                for wo in range(W):
                    wi = wo + kw - 1
                    if 0 <= wi < W:
                        bw[kh, wi * ci:(wi + 1) * ci,
                               wo * co:(wo + 1) * co] = wt[kh, kw]
        return jnp.asarray(bw, compute_dtype)

    cout = int(raw["w1"].shape[0])
    cg = cout // groups

    def col(v):  # per-channel vector -> lane-dense (1, W*Cout)
        return jnp.tile(jnp.asarray(v, jnp.float32).reshape(1, cout), (1, W))

    c_idx = np.arange(W * cout) % cout
    gsel = (c_idx[:, None] // cg == np.arange(groups)[None, :]).astype(np.float32)

    return {
        "w1": banded(raw["w1"]), "b1": col(raw["b1"]),
        "g1": col(raw["g1"]), "be1": col(raw["be1"]),
        "w2": banded(raw["w2"]), "b2": col(raw["b2"]),
        "g2": col(raw["g2"]), "be2": col(raw["be2"]),
        "gsel": jnp.asarray(gsel), "gsel_t": jnp.asarray(gsel.T),
    }


# ----------------------------------------------------------------------------
# Forward wrapper (only glue: NCHW <-> lane-dense folded layout)
# ----------------------------------------------------------------------------

def conv_block_forward(x_nchw, p):
    """x_nchw: (N, Cin, H, W) fp32 -> (N, Cout, H, W) fp32."""
    N, Cin, H, W = x_nchw.shape
    WC = p["w1"].shape[2]            # W * Cout
    Cout = WC // W
    WCin = W * Cin

    # NCHW -> NHWC with W*Cin folded into the lane dim (no jnp.pad round-trip).
    x = jnp.transpose(x_nchw, (0, 2, 3, 1)).reshape(N, H, WCin)

    def full(a):
        return pl.BlockSpec(a.shape, lambda n, _nd=a.ndim: (0,) * _nd)

    args = (x, p["w1"], p["b1"], p["g1"], p["be1"],
            p["w2"], p["b2"], p["g2"], p["be2"], p["gsel"], p["gsel_t"])
    in_specs = ([pl.BlockSpec((1, H, WCin), lambda n: (n, 0, 0))]
                + [full(a) for a in args[1:]])

    out = pl.pallas_call(
        convblock_kernel,
        out_shape=jax.ShapeDtypeStruct((N, H, WC), jnp.float32),
        grid_spec=pltpu.PrefetchScalarGridSpec(
            num_scalar_prefetch=0,
            grid=(N,),                                   # per-sample; GN is per-sample
            in_specs=in_specs,
            out_specs=pl.BlockSpec((1, H, WC), lambda n: (n, 0, 0)),
        ),
        compiler_params=pltpu.CompilerParams(
            dimension_semantics=("parallel",)),          # megacore / v7x 2-TC split
    )(*args)

    return jnp.transpose(out.reshape(N, H, W, Cout), (0, 3, 1, 2))   # back to NCHW


# ----------------------------------------------------------------------------
# Deterministic init (PyTorch default-like uniform bounds) + pure-XLA reference
# ----------------------------------------------------------------------------

def init_params(key, cin, cout):
    k1, k2, k3, k4 = jax.random.split(key, 4)

    def conv_init(kw, kb, ci, co):
        bound = 1.0 / math.sqrt(ci * 9)
        w = jax.random.uniform(kw, (co, ci, 3, 3), jnp.float32, -bound, bound)
        b = jax.random.uniform(kb, (co,), jnp.float32, -bound, bound)
        return w, b

    w1, b1 = conv_init(k1, k2, cin, cout)
    w2, b2 = conv_init(k3, k4, cout, cout)
    ones, zeros = jnp.ones((cout,), jnp.float32), jnp.zeros((cout,), jnp.float32)
    return {"w1": w1, "b1": b1, "g1": ones, "be1": zeros,
            "w2": w2, "b2": b2, "g2": ones, "be2": zeros}


def reference_forward(x_nchw, raw, groups=GROUPS):
    def conv(x, w, b):
        y = jax.lax.conv_general_dilated(
            x, w, window_strides=(1, 1), padding=((1, 1), (1, 1)),
            dimension_numbers=("NCHW", "OIHW", "NCHW"),
            precision=jax.lax.Precision.HIGHEST)
        return y + b[None, :, None, None]

    def gn_relu(x, g, bt):
        N, C, H, W = x.shape
        xg = x.reshape(N, groups, C // groups, H, W)
        m = xg.mean(axis=(2, 3, 4), keepdims=True)
        v = ((xg - m) ** 2).mean(axis=(2, 3, 4), keepdims=True)
        y = ((xg - m) * jax.lax.rsqrt(v + EPS)).reshape(N, C, H, W)
        return jnp.maximum(y * g[None, :, None, None] + bt[None, :, None, None], 0.0)

    y = gn_relu(conv(x_nchw, raw["w1"], raw["b1"]), raw["g1"], raw["be1"])
    y = gn_relu(conv(y, raw["w2"], raw["b2"]), raw["g2"], raw["be2"])
    return y


# ----------------------------------------------------------------------------

if __name__ == "__main__":
    key = jax.random.PRNGKey(0)
    kp, kx = jax.random.split(key)

    IN_CH, OUT_CH, HW = 4, 16, 16
    raw = init_params(kp, IN_CH, OUT_CH)
    prep = prepare_params(raw, spatial_w=HW)

    x = jax.random.normal(kx, (2, IN_CH, HW, HW), jnp.float32)   # NCHW like PyTorch

    fwd = jax.jit(conv_block_forward)
    out = jax.block_until_ready(fwd(x, prep))

    assert out.shape == (2, OUT_CH, HW, HW), out.shape
    assert bool(jnp.all(jnp.isfinite(out)))

    ref = jax.block_until_ready(jax.jit(reference_forward)(x, raw))
    err = float(jnp.max(jnp.abs(out - ref)))
    # bf16 MXU operands (f32 accumulation) vs the Precision.HIGHEST f32 reference:
    # allow a bf16-level tolerance; GroupNorm statistics stay in f32.
    assert err < 5e-2, f"max abs error vs XLA reference: {err}"

    print("KERNEL_OK")
</pallas_src>

<mosaic_0001>
module attributes {stable_mosaic.version = 11 : i64} {
  func.func @convblock_kernel(%arg0: i32, %arg1: memref<1x16x64xf32, #tpu.memory_space<vmem>>, %arg2: memref<3x64x256xbf16, #tpu.memory_space<vmem>>, %arg3: memref<1x256xf32, #tpu.memory_space<vmem>>, %arg4: memref<1x256xf32, #tpu.memory_space<vmem>>, %arg5: memref<1x256xf32, #tpu.memory_space<vmem>>, %arg6: memref<3x256x256xbf16, #tpu.memory_space<vmem>>, %arg7: memref<1x256xf32, #tpu.memory_space<vmem>>, %arg8: memref<1x256xf32, #tpu.memory_space<vmem>>, %arg9: memref<1x256xf32, #tpu.memory_space<vmem>>, %arg10: memref<256x8xf32, #tpu.memory_space<vmem>>, %arg11: memref<8x256xf32, #tpu.memory_space<vmem>>, %arg12: memref<1x16x256xf32, #tpu.memory_space<vmem>>) attributes {dimension_semantics = [#tpu.dimension_semantics<parallel>], iteration_bounds = array<i64: 2>, scalar_prefetch = 0 : i64, scratch_operands = 0 : i64, tpu.core_type = #tpu.core_type<tc>, window_params = [{transform_indices = @transform_0, window_bounds = array<i64: 1, 16, 64>}, {pipeline_mode = #tpu.pipeline_mode<synchronous>, transform_indices = @transform_1, window_bounds = array<i64: 3, 64, 256>}, {pipeline_mode = #tpu.pipeline_mode<synchronous>, transform_indices = @transform_2, window_bounds = array<i64: 1, 256>}, {pipeline_mode = #tpu.pipeline_mode<synchronous>, transform_indices = @transform_3, window_bounds = array<i64: 1, 256>}, {pipeline_mode = #tpu.pipeline_mode<synchronous>, transform_indices = @transform_4, window_bounds = array<i64: 1, 256>}, {pipeline_mode = #tpu.pipeline_mode<synchronous>, transform_indices = @transform_5, window_bounds = array<i64: 3, 256, 256>}, {pipeline_mode = #tpu.pipeline_mode<synchronous>, transform_indices = @transform_6, window_bounds = array<i64: 1, 256>}, {pipeline_mode = #tpu.pipeline_mode<synchronous>, transform_indices = @transform_7, window_bounds = array<i64: 1, 256>}, {pipeline_mode = #tpu.pipeline_mode<synchronous>, transform_indices = @transform_8, window_bounds = array<i64: 1, 256>}, {pipeline_mode = #tpu.pipeline_mode<synchronous>, transform_indices = @transform_9, window_bounds = array<i64: 256, 8>}, {pipeline_mode = #tpu.pipeline_mode<synchronous>, transform_indices = @transform_10, window_bounds = array<i64: 8, 256>}, {transform_indices = @transform_11, window_bounds = array<i64: 1, 16, 256>}]} {
    %c0 = arith.constant 0 : index
    %c0_0 = arith.constant 0 : index
    %0 = vector.load %arg10[%c0, %c0_0] : memref<256x8xf32, #tpu.memory_space<vmem>>, vector<256x8xf32>
    %c0_1 = arith.constant 0 : index
    %c0_2 = arith.constant 0 : index
    %1 = vector.load %arg11[%c0_1, %c0_2] : memref<8x256xf32, #tpu.memory_space<vmem>>, vector<8x256xf32>
    %c0_3 = arith.constant 0 : index
    %c0_4 = arith.constant 0 : index
    %c0_5 = arith.constant 0 : index
    %2 = vector.load %arg1[%c0_3, %c0_4, %c0_5] : memref<1x16x64xf32, #tpu.memory_space<vmem>>, vector<1x16x64xf32>
    %3 = vector.shape_cast %2 : vector<1x16x64xf32> to vector<16x64xf32>
    %4 = arith.truncf %3 : vector<16x64xf32> to vector<16x64xbf16>
    %cst = arith.constant 0.000000e+00 : bf16
    %5 = vector.broadcast %cst : bf16 to vector<1x64xbf16>
    %6 = tpu.concatenate %5, %4, %5 in 0 : vector<1x64xbf16>, vector<16x64xbf16>, vector<1x64xbf16> -> vector<18x64xbf16>
    %cst_6 = arith.constant 0.000000e+00 : f32
    %7 = vector.broadcast %cst_6 : f32 to vector<16x256xf32>
    %8 = vector.extract_strided_slice %6 {offsets = [0, 0], sizes = [16, 64], strides = [1, 1]} : vector<18x64xbf16> to vector<16x64xbf16>
    %c0_7 = arith.constant 0 : index
    %c0_8 = arith.constant 0 : index
    %c0_9 = arith.constant 0 : index
    %9 = vector.load %arg2[%c0_7, %c0_8, %c0_9] : memref<3x64x256xbf16, #tpu.memory_space<vmem>>, vector<1x64x256xbf16>
    %10 = vector.shape_cast %9 : vector<1x64x256xbf16> to vector<64x256xbf16>
    %cst_10 = arith.constant dense<0.000000e+00> : vector<16x256xf32>
    %11 = tpu.matmul %8, %10, %cst_10 {dimension_numbers = #tpu.dot_dimension_numbers<[1], [0], [0], [1], [0, 0, 1, 1], [], []>} : vector<16x64xbf16>, vector<64x256xbf16>, vector<16x256xf32> -> vector<16x256xf32>
    %12 = arith.addf %7, %11 : vector<16x256xf32>
    %13 = vector.extract_strided_slice %6 {offsets = [1, 0], sizes = [16, 64], strides = [1, 1]} : vector<18x64xbf16> to vector<16x64xbf16>
    %c1 = arith.constant 1 : index
    %c0_11 = arith.constant 0 : index
    %c0_12 = arith.constant 0 : index
    %14 = vector.load %arg2[%c1, %c0_11, %c0_12] : memref<3x64x256xbf16, #tpu.memory_space<vmem>>, vector<1x64x256xbf16>
    %15 = vector.shape_cast %14 : vector<1x64x256xbf16> to vector<64x256xbf16>
    %cst_13 = arith.constant dense<0.000000e+00> : vector<16x256xf32>
    %16 = tpu.matmul %13, %15, %cst_13 {dimension_numbers = #tpu.dot_dimension_numbers<[1], [0], [0], [1], [0, 0, 1, 1], [], []>} : vector<16x64xbf16>, vector<64x256xbf16>, vector<16x256xf32> -> vector<16x256xf32>
    %17 = arith.addf %12, %16 : vector<16x256xf32>
    %18 = vector.extract_strided_slice %6 {offsets = [2, 0], sizes = [16, 64], strides = [1, 1]} : vector<18x64xbf16> to vector<16x64xbf16>
    %c2 = arith.constant 2 : index
    %c0_14 = arith.constant 0 : index
    %c0_15 = arith.constant 0 : index
    %19 = vector.load %arg2[%c2, %c0_14, %c0_15] : memref<3x64x256xbf16, #tpu.memory_space<vmem>>, vector<1x64x256xbf16>
    %20 = vector.shape_cast %19 : vector<1x64x256xbf16> to vector<64x256xbf16>
    %cst_16 = arith.constant dense<0.000000e+00> : vector<16x256xf32>
    %21 = tpu.matmul %18, %20, %cst_16 {dimension_numbers = #tpu.dot_dimension_numbers<[1], [0], [0], [1], [0, 0, 1, 1], [], []>} : vector<16x64xbf16>, vector<64x256xbf16>, vector<16x256xf32> -> vector<16x256xf32>
    %22 = arith.addf %17, %21 : vector<16x256xf32>
    %c0_17 = arith.constant 0 : index
    %c0_18 = arith.constant 0 : index
    %23 = vector.load %arg3[%c0_17, %c0_18] : memref<1x256xf32, #tpu.memory_space<vmem>>, vector<1x256xf32>
    %24 = vector.broadcast %23 : vector<1x256xf32> to vector<16x256xf32>
    %25 = arith.addf %22, %24 : vector<16x256xf32>
    %c0_19 = arith.constant 0 : index
    %c0_20 = arith.constant 0 : index
    %26 = vector.load %arg4[%c0_19, %c0_20] : memref<1x256xf32, #tpu.memory_space<vmem>>, vector<1x256xf32>
    %c0_21 = arith.constant 0 : index
    %c0_22 = arith.constant 0 : index
    %27 = vector.load %arg5[%c0_21, %c0_22] : memref<1x256xf32, #tpu.memory_space<vmem>>, vector<1x256xf32>
    %cst_23 = arith.constant dense<0.000000e+00> : vector<256xf32>
    %28 = vector.multi_reduction <add>, %25, %cst_23 [0] : vector<16x256xf32> to vector<256xf32>
    %29 = vector.shape_cast %28 : vector<256xf32> to vector<1x256xf32>
    %cst_24 = arith.constant dense<0.000000e+00> : vector<1x8xf32>
    %30 = tpu.matmul %29, %0, %cst_24 {dimension_numbers = #tpu.dot_dimension_numbers<[1], [0], [0], [1], [0, 0, 1, 1], [], []>} : vector<1x256xf32>, vector<256x8xf32>, vector<1x8xf32> -> vector<1x8xf32>
    %cst_25 = arith.constant 0.001953125 : f32
    %31 = vector.broadcast %cst_25 : f32 to vector<1x8xf32>
    %32 = arith.mulf %30, %31 : vector<1x8xf32>
    %cst_26 = arith.constant dense<0.000000e+00> : vector<1x256xf32>
    %33 = tpu.matmul %32, %1, %cst_26 {dimension_numbers = #tpu.dot_dimension_numbers<[1], [0], [0], [1], [0, 0, 1, 1], [], []>} : vector<1x8xf32>, vector<8x256xf32>, vector<1x256xf32> -> vector<1x256xf32>
    %34 = vector.broadcast %33 : vector<1x256xf32> to vector<16x256xf32>
    %35 = arith.subf %25, %34 : vector<16x256xf32>
    %36 = arith.mulf %35, %35 : vector<16x256xf32>
    %cst_27 = arith.constant dense<0.000000e+00> : vector<256xf32>
    %37 = vector.multi_reduction <add>, %36, %cst_27 [0] : vector<16x256xf32> to vector<256xf32>
    %38 = vector.shape_cast %37 : vector<256xf32> to vector<1x256xf32>
    %cst_28 = arith.constant dense<0.000000e+00> : vector<1x8xf32>
    %39 = tpu.matmul %38, %0, %cst_28 {dimension_numbers = #tpu.dot_dimension_numbers<[1], [0], [0], [1], [0, 0, 1, 1], [], []>} : vector<1x256xf32>, vector<256x8xf32>, vector<1x8xf32> -> vector<1x8xf32>
    %cst_29 = arith.constant 0.001953125 : f32
    %40 = vector.broadcast %cst_29 : f32 to vector<1x8xf32>
    %41 = arith.mulf %39, %40 : vector<1x8xf32>
    %cst_30 = arith.constant 9.99999974E-6 : f32
    %42 = vector.broadcast %cst_30 : f32 to vector<1x8xf32>
    %43 = arith.addf %41, %42 : vector<1x8xf32>
    %44 = math.rsqrt %43 : vector<1x8xf32>
    %cst_31 = arith.constant dense<0.000000e+00> : vector<1x256xf32>
    %45 = tpu.matmul %44, %1, %cst_31 {dimension_numbers = #tpu.dot_dimension_numbers<[1], [0], [0], [1], [0, 0, 1, 1], [], []>} : vector<1x8xf32>, vector<8x256xf32>, vector<1x256xf32> -> vector<1x256xf32>
    %46 = vector.broadcast %45 : vector<1x256xf32> to vector<16x256xf32>
    %47 = arith.mulf %35, %46 : vector<16x256xf32>
    %48 = vector.broadcast %26 : vector<1x256xf32> to vector<16x256xf32>
    %49 = arith.mulf %47, %48 : vector<16x256xf32>
    %50 = vector.broadcast %27 : vector<1x256xf32> to vector<16x256xf32>
    %51 = arith.addf %49, %50 : vector<16x256xf32>
    %cst_32 = arith.constant 0.000000e+00 : f32
    %52 = vector.broadcast %cst_32 : f32 to vector<16x256xf32>
    %53 = arith.maximumf %51, %52 : vector<16x256xf32>
    %cst_33 = arith.constant 0.000000e+00 : bf16
    %54 = vector.broadcast %cst_33 : bf16 to vector<1x256xbf16>
    %55 = arith.truncf %53 : vector<16x256xf32> to vector<16x256xbf16>
    %56 = tpu.concatenate %54, %55, %54 in 0 : vector<1x256xbf16>, vector<16x256xbf16>, vector<1x256xbf16> -> vector<18x256xbf16>
    %cst_34 = arith.constant 0.000000e+00 : f32
    %57 = vector.broadcast %cst_34 : f32 to vector<16x256xf32>
    %58 = vector.extract_strided_slice %56 {offsets = [0, 0], sizes = [16, 256], strides = [1, 1]} : vector<18x256xbf16> to vector<16x256xbf16>
    %c0_35 = arith.constant 0 : index
    %c0_36 = arith.constant 0 : index
    %c0_37 = arith.constant 0 : index
    %59 = vector.load %arg6[%c0_35, %c0_36, %c0_37] : memref<3x256x256xbf16, #tpu.memory_space<vmem>>, vector<1x256x256xbf16>
    %60 = vector.shape_cast %59 : vector<1x256x256xbf16> to vector<256x256xbf16>
    %cst_38 = arith.constant dense<0.000000e+00> : vector<16x256xf32>
    %61 = tpu.matmul %58, %60, %cst_38 {dimension_numbers = #tpu.dot_dimension_numbers<[1], [0], [0], [1], [0, 0, 1, 1], [], []>} : vector<16x256xbf16>, vector<256x256xbf16>, vector<16x256xf32> -> vector<16x256xf32>
    %62 = arith.addf %57, %61 : vector<16x256xf32>
    %63 = vector.extract_strided_slice %56 {offsets = [1, 0], sizes = [16, 256], strides = [1, 1]} : vector<18x256xbf16> to vector<16x256xbf16>
    %c1_39 = arith.constant 1 : index
    %c0_40 = arith.constant 0 : index
    %c0_41 = arith.constant 0 : index
    %64 = vector.load %arg6[%c1_39, %c0_40, %c0_41] : memref<3x256x256xbf16, #tpu.memory_space<vmem>>, vector<1x256x256xbf16>
    %65 = vector.shape_cast %64 : vector<1x256x256xbf16> to vector<256x256xbf16>
    %cst_42 = arith.constant dense<0.000000e+00> : vector<16x256xf32>
    %66 = tpu.matmul %63, %65, %cst_42 {dimension_numbers = #tpu.dot_dimension_numbers<[1], [0], [0], [1], [0, 0, 1, 1], [], []>} : vector<16x256xbf16>, vector<256x256xbf16>, vector<16x256xf32> -> vector<16x256xf32>
    %67 = arith.addf %62, %66 : vector<16x256xf32>
    %68 = vector.extract_strided_slice %56 {offsets = [2, 0], sizes = [16, 256], strides = [1, 1]} : vector<18x256xbf16> to vector<16x256xbf16>
    %c2_43 = arith.constant 2 : index
    %c0_44 = arith.constant 0 : index
    %c0_45 = arith.constant 0 : index
    %69 = vector.load %arg6[%c2_43, %c0_44, %c0_45] : memref<3x256x256xbf16, #tpu.memory_space<vmem>>, vector<1x256x256xbf16>
    %70 = vector.shape_cast %69 : vector<1x256x256xbf16> to vector<256x256xbf16>
    %cst_46 = arith.constant dense<0.000000e+00> : vector<16x256xf32>
    %71 = tpu.matmul %68, %70, %cst_46 {dimension_numbers = #tpu.dot_dimension_numbers<[1], [0], [0], [1], [0, 0, 1, 1], [], []>} : vector<16x256xbf16>, vector<256x256xbf16>, vector<16x256xf32> -> vector<16x256xf32>
    %72 = arith.addf %67, %71 : vector<16x256xf32>
    %c0_47 = arith.constant 0 : index
    %c0_48 = arith.constant 0 : index
    %73 = vector.load %arg7[%c0_47, %c0_48] : memref<1x256xf32, #tpu.memory_space<vmem>>, vector<1x256xf32>
    %74 = vector.broadcast %73 : vector<1x256xf32> to vector<16x256xf32>
    %75 = arith.addf %72, %74 : vector<16x256xf32>
    %c0_49 = arith.constant 0 : index
    %c0_50 = arith.constant 0 : index
    %76 = vector.load %arg8[%c0_49, %c0_50] : memref<1x256xf32, #tpu.memory_space<vmem>>, vector<1x256xf32>
    %c0_51 = arith.constant 0 : index
    %c0_52 = arith.constant 0 : index
    %77 = vector.load %arg9[%c0_51, %c0_52] : memref<1x256xf32, #tpu.memory_space<vmem>>, vector<1x256xf32>
    %cst_53 = arith.constant dense<0.000000e+00> : vector<256xf32>
    %78 = vector.multi_reduction <add>, %75, %cst_53 [0] : vector<16x256xf32> to vector<256xf32>
    %79 = vector.shape_cast %78 : vector<256xf32> to vector<1x256xf32>
    %cst_54 = arith.constant dense<0.000000e+00> : vector<1x8xf32>
    %80 = tpu.matmul %79, %0, %cst_54 {dimension_numbers = #tpu.dot_dimension_numbers<[1], [0], [0], [1], [0, 0, 1, 1], [], []>} : vector<1x256xf32>, vector<256x8xf32>, vector<1x8xf32> -> vector<1x8xf32>
    %cst_55 = arith.constant 0.001953125 : f32
    %81 = vector.broadcast %cst_55 : f32 to vector<1x8xf32>
    %82 = arith.mulf %80, %81 : vector<1x8xf32>
    %cst_56 = arith.constant dense<0.000000e+00> : vector<1x256xf32>
    %83 = tpu.matmul %82, %1, %cst_56 {dimension_numbers = #tpu.dot_dimension_numbers<[1], [0], [0], [1], [0, 0, 1, 1], [], []>} : vector<1x8xf32>, vector<8x256xf32>, vector<1x256xf32> -> vector<1x256xf32>
    %84 = vector.broadcast %83 : vector<1x256xf32> to vector<16x256xf32>
    %85 = arith.subf %75, %84 : vector<16x256xf32>
    %86 = arith.mulf %85, %85 : vector<16x256xf32>
    %cst_57 = arith.constant dense<0.000000e+00> : vector<256xf32>
    %87 = vector.multi_reduction <add>, %86, %cst_57 [0] : vector<16x256xf32> to vector<256xf32>
    %88 = vector.shape_cast %87 : vector<256xf32> to vector<1x256xf32>
    %cst_58 = arith.constant dense<0.000000e+00> : vector<1x8xf32>
    %89 = tpu.matmul %88, %0, %cst_58 {dimension_numbers = #tpu.dot_dimension_numbers<[1], [0], [0], [1], [0, 0, 1, 1], [], []>} : vector<1x256xf32>, vector<256x8xf32>, vector<1x8xf32> -> vector<1x8xf32>
    %cst_59 = arith.constant 0.001953125 : f32
    %90 = vector.broadcast %cst_59 : f32 to vector<1x8xf32>
    %91 = arith.mulf %89, %90 : vector<1x8xf32>
    %cst_60 = arith.constant 9.99999974E-6 : f32
    %92 = vector.broadcast %cst_60 : f32 to vector<1x8xf32>
    %93 = arith.addf %91, %92 : vector<1x8xf32>
    %94 = math.rsqrt %93 : vector<1x8xf32>
    %cst_61 = arith.constant dense<0.000000e+00> : vector<1x256xf32>
    %95 = tpu.matmul %94, %1, %cst_61 {dimension_numbers = #tpu.dot_dimension_numbers<[1], [0], [0], [1], [0, 0, 1, 1], [], []>} : vector<1x8xf32>, vector<8x256xf32>, vector<1x256xf32> -> vector<1x256xf32>
    %96 = vector.broadcast %95 : vector<1x256xf32> to vector<16x256xf32>
    %97 = arith.mulf %85, %96 : vector<16x256xf32>
    %98 = vector.broadcast %76 : vector<1x256xf32> to vector<16x256xf32>
    %99 = arith.mulf %97, %98 : vector<16x256xf32>
    %100 = vector.broadcast %77 : vector<1x256xf32> to vector<16x256xf32>
    %101 = arith.addf %99, %100 : vector<16x256xf32>
    %cst_62 = arith.constant 0.000000e+00 : f32
    %102 = vector.broadcast %cst_62 : f32 to vector<16x256xf32>
    %103 = arith.maximumf %101, %102 : vector<16x256xf32>
    %c0_63 = arith.constant 0 : index
    %c0_64 = arith.constant 0 : index
    %c0_65 = arith.constant 0 : index
    %104 = vector.load %arg12[%c0_63, %c0_64, %c0_65] : memref<1x16x256xf32, #tpu.memory_space<vmem>>, vector<1x16x256xf32>
    %105 = vector.shape_cast %104 : vector<1x16x256xf32> to vector<16x256xf32>
    %106 = vector.shape_cast %103 : vector<16x256xf32> to vector<1x16x256xf32>
    tpu.vector_store %arg12[%c0_63, %c0_64, %c0_65], %106 {strides = array<i32>} : memref<1x16x256xf32, #tpu.memory_space<vmem>>, vector<1x16x256xf32>,
    return
  }
  func.func @transform_0(%arg0: i32) -> (i32, i32, i32) {
    %c0_i32 = arith.constant 0 : i32
    %c0_i32_0 = arith.constant 0 : i32
    %c0_i32_1 = arith.constant 0 : i32
    return %arg0, %c0_i32, %c0_i32_0 : i32, i32, i32
  }
  func.func @transform_1(%arg0: i32) -> (i32, i32, i32) {
    %c0_i32 = arith.constant 0 : i32
    %c0_i32_0 = arith.constant 0 : i32
    %c0_i32_1 = arith.constant 0 : i32
    %c0_i32_2 = arith.constant 0 : i32
    return %c0_i32, %c0_i32_0, %c0_i32_1 : i32, i32, i32
  }
  func.func @transform_2(%arg0: i32) -> (i32, i32) {
    %c0_i32 = arith.constant 0 : i32
    %c0_i32_0 = arith.constant 0 : i32
    %c0_i32_1 = arith.constant 0 : i32
    return %c0_i32, %c0_i32_0 : i32, i32
  }
  func.func @transform_3(%arg0: i32) -> (i32, i32) {
    %c0_i32 = arith.constant 0 : i32
    %c0_i32_0 = arith.constant 0 : i32
    %c0_i32_1 = arith.constant 0 : i32
    return %c0_i32, %c0_i32_0 : i32, i32
  }
  func.func @transform_4(%arg0: i32) -> (i32, i32) {
    %c0_i32 = arith.constant 0 : i32
    %c0_i32_0 = arith.constant 0 : i32
    %c0_i32_1 = arith.constant 0 : i32
    return %c0_i32, %c0_i32_0 : i32, i32
  }
  func.func @transform_5(%arg0: i32) -> (i32, i32, i32) {
    %c0_i32 = arith.constant 0 : i32
    %c0_i32_0 = arith.constant 0 : i32
    %c0_i32_1 = arith.constant 0 : i32
    %c0_i32_2 = arith.constant 0 : i32
    return %c0_i32, %c0_i32_0, %c0_i32_1 : i32, i32, i32
  }
  func.func @transform_6(%arg0: i32) -> (i32, i32) {
    %c0_i32 = arith.constant 0 : i32
    %c0_i32_0 = arith.constant 0 : i32
    %c0_i32_1 = arith.constant 0 : i32
    return %c0_i32, %c0_i32_0 : i32, i32
  }
  func.func @transform_7(%arg0: i32) -> (i32, i32) {
    %c0_i32 = arith.constant 0 : i32
    %c0_i32_0 = arith.constant 0 : i32
    %c0_i32_1 = arith.constant 0 : i32
    return %c0_i32, %c0_i32_0 : i32, i32
  }
  func.func @transform_8(%arg0: i32) -> (i32, i32) {
    %c0_i32 = arith.constant 0 : i32
    %c0_i32_0 = arith.constant 0 : i32
    %c0_i32_1 = arith.constant 0 : i32
    return %c0_i32, %c0_i32_0 : i32, i32
  }
  func.func @transform_9(%arg0: i32) -> (i32, i32) {
    %c0_i32 = arith.constant 0 : i32
    %c0_i32_0 = arith.constant 0 : i32
    %c0_i32_1 = arith.constant 0 : i32
    return %c0_i32, %c0_i32_0 : i32, i32
  }
  func.func @transform_10(%arg0: i32) -> (i32, i32) {
    %c0_i32 = arith.constant 0 : i32
    %c0_i32_0 = arith.constant 0 : i32
    %c0_i32_1 = arith.constant 0 : i32
    return %c0_i32, %c0_i32_0 : i32, i32
  }
  func.func @transform_11(%arg0: i32) -> (i32, i32, i32) {
    %c0_i32 = arith.constant 0 : i32
    %c0_i32_0 = arith.constant 0 : i32
    %c0_i32_1 = arith.constant 0 : i32
    return %arg0, %c0_i32, %c0_i32_0 : i32, i32, i32
  }
}

</mosaic_0001>

<bundles_post_ra>
// kernel: conv_block_forward.1
= control target key start
LH: loop header
LB: loop body
LE: loop exit
PB: predicated region body
PF: predicated region fallthrough
CT: control target
= control target key end

     0   :  { %16 = vsyncpa [#allocation3], 0  ;;  %s3028_s17 = smov 0   ;;  %s3594_s0 = inlined_call_operand.vmem [shape: f32[2,16,64], index: 0, kind: input, shape index: {}]   ;;  %s3595_s1 = inlined_call_operand.vmem [shape: bf16[3,64,256], index: 1, kind: input, shape index: {}]   ;;  %s3596_s2 = inlined_call_operand.vmem [shape: f32[1,256], index: 2, kind: input, shape index: {}]   ;;  %s3597_s3 = inlined_call_operand.vmem [shape: f32[1,256], index: 3, kind: input, shape index: {}]   ;;  %s3598_s4 = inlined_call_operand.vmem [shape: f32[1,256], index: 4, kind: input, shape index: {}]   ;;  %s3599_s5 = inlined_call_operand.hbm [shape: bf16[3,256,256], index: 5, kind: input, shape index: {}]   ;;  %s3600_s6 = inlined_call_operand.vmem [shape: f32[1,256], index: 6, kind: input, shape index: {}]   ;;  %s3601_s7 = inlined_call_operand.vmem [shape: f32[1,256], index: 7, kind: input, shape index: {}]   ;;  %s3602_s8 = inlined_call_operand.vmem [shape: f32[1,256], index: 8, kind: input, shape index: {}]   ;;  %s3603_s9 = inlined_call_operand.vmem [shape: f32[256,8], index: 9, kind: input, shape index: {}]   ;;  %s3604_s10 = inlined_call_operand.vmem [shape: f32[8,256], index: 10, kind: input, shape index: {}]   ;;  %s3605_s11 = inlined_call_operand.vmem [shape: f32[2,16,256], index: 11, kind: output, shape index: {}]  }
   0x1 LB: > { %s3034_s18 = sadd.s32 4294967295, %s2961_s17   ;;  %p2408_p0 = scmp.ge.s32.totalorder %s2961_s17, 1  ;;  %s2961_s17 = sphi %s3028_s17, %s22_s17  }
   0x2   : > { %p289_p1 = scmp.lt.s32.totalorder %s2961_s17, 3  ;;  %s2963_s19 = smov [#allocation2]  }
   0x3   : > { %s313_s20 = sshll.u32 %s2963_s19, 4  ;;  %p2712_p3 = scmp.eq.s32.totalorder %s3034_s18, 0  ;;  %s314_s20 = int_to_ptr.vmem [resolvable:$true] %s313_s20 }
   0x4   : > { %p3038_p2 = pnand %p2408_p0, %p289_p1  ;;  %s2936_s22 = scalar_lea.vmem %s314_s20, 12288 }
   0x5   : > { %p2937_p7 = scmp.ne.s32.totalorder %s314_s20, %s2936_s22  ;;  %p2944_p10 = scmp.lt.s32.totalorder %s314_s20, %s314_s20 }
   0x6   : > { %p2708_p4 = pneg %p3038_p2  ;;  %p2945_p11 = scmp.lt.s32.totalorder %s2936_s22, %s2936_s22 }
   0x8   : > { %p2709_p5 = pnand %p2712_p3, %p2708_p4  ;;  %p2946_p12 = por %p2945_p11, %p2944_p10 }
   0xa   : > { %p2927_p6 = pneg %p2709_p5 }
   0xc   : > { %p2939_p8 = pnand %p2937_p7, %p2927_p6 }
   0xe   : > { %p2940_p9 = pneg %p2939_p8 }
  0x10   : > { %p2947_p13 = pnand %p2946_p12, %p2940_p9 }
  0x12   : > { %2950 = shalt.err (!%p2947_p13)
}
  0x13   : > { %s2964_s23 = smov 128   ;;  %s2965_s24 = smov 8  }
  0x14   : > { %2711 = dma.hbm_to_vmem [thread:$0]  (!%p2709_p5), %s3599_s5, 12288, %s314_s20, [#allocation3], %s2964_s23, %s2964_s23, %s2965_s24  }
  0x15   : > { %352 = sbr.rel (%p3038_p2) target bundleno = 2255 (0x8cf), region = 64 }
  0x1a   : > { %2956 = dma.done.wait (%p2712_p3), [#allocation3], 12288  }
  0x1b   : > { %2958 = vsyncadd (%p2712_p3), [#allocation3], 4294955008  ;;  %v2966_v0 = vmov 0   ;;  %p392_p0 = scmp.lt.s32.totalorder %s3034_s18, 1  ;;  %v2727_v1 = vld [vmem:[%s3595_s1 + $0x74] ss:$8 sps:$4 sm:$0xff]  }
  0x1c   : > { %560 = vmatprep.mubr.bf16.mxu0 %v2966_v0  ;;  %645 = vmatprep.mubr.bf16.mxu1 %v2966_v0  ;;  %v2729_v2 = vld [vmem:[%s3595_s1 + $0x34] ss:$8 sps:$4 sm:$0xff]   ;;  %v2731_v3 = vld [vmem:[%s3595_s1 + $0x70] ss:$8 sps:$4 sm:$0xff]   ;;  %v2733_v5 = vld [vmem:[%s3595_s1 + $0x64] ss:$8 sps:$4 sm:$0xff]  }
  0x1d   : > { %s3613_s18 = smov (!%p392_p0, %s3034_s18), 1  ;;  %536 = vmatprep.subr.bf16.mxu0 %v2727_v1  ;;  %v2732_v4 = vld [vmem:[%s3595_s1 + $0x30] ss:$8 sps:$4 sm:$0xff]   ;;  %621 = vmatprep.subr.bf16.mxu1 %v2729_v2  ;;  %v2735_v6 = vld [vmem:[%s3595_s1 + $0x24] ss:$8 sps:$4 sm:$0xff]   ;;  %vm449_vm0 = vcmask 1040384  }
  0x1e   : > { %537 = vmatpush1.bf16.msra.mxu0 %v2731_v3  ;;  %622 = vmatpush1.bf16.msra.mxu1 %v2732_v4  ;;  %v2737_v7 = vld [vmem:[%s3595_s1 + $0x60] ss:$8 sps:$4 sm:$0xff]   ;;  %s2562_s24 = sshll.u32 %s3613_s18, 4  ;;  %v2739_v9 = vld [vmem:[%s3595_s1 + $0x54] ss:$8 sps:$4 sm:$0xff]   ;;  %vm524_vm3 = vcmask 523264  }
  0x1f   : > { %538 = vmatprep.subr.bf16.mxu0 %v2733_v5  ;;  %v2738_v8 = vld [vmem:[%s3595_s1 + $0x20] ss:$8 sps:$4 sm:$0xff]   ;;  %623 = vmatprep.subr.bf16.mxu1 %v2735_v6  ;;  %v2741_v10 = vld [vmem:[%s3595_s1 + $0x14] ss:$8 sps:$4 sm:$0xff]   ;;  %v2743_v11 = vld [vmem:[%s3595_s1 + $0x50] ss:$8 sps:$4 sm:$0xff]   ;;  %s396_s20 = scalar_lea.vmem %s3594_s0, %s2562_s24 }
  0x20   : > { %v2744_v12 = vld [vmem:[%s3595_s1 + $0x10] ss:$8 sps:$4 sm:$0xff]   ;;  %v2745_v13 = vld [vmem:[%s3595_s1 + $0x44] ss:$8 sps:$4 sm:$0xff]   ;;  %v2749_v17 = vld [vmem:[%s3595_s1 + $0x40] ss:$8 sps:$4 sm:$0xff]  }
  0x21   : > { %v2747_v14 = vld [vmem:[%s3595_s1 + $0x4] ss:$8 sps:$4 sm:$0xff]   ;;  %v2750_v18 = vld [vmem:[%s3595_s1] ss:$8 sps:$4 sm:$0xff]   ;;  %vm450_vm1 = vsmask.f32 256 }
  0x22   : > { %539 = vmatpush1.bf16.msra.mxu0 %v2737_v7  ;;  %624 = vmatpush1.bf16.msra.mxu1 %v2738_v8  ;;  %v437_v15 = vld [vmem:[%s396_s20] sm:$0xff]  ;;  %v438_v16 = vld [vmem:[%s396_s20 + $0x8] sm:$0xff]  ;;  %v2753_v20 = vld [vmem:[%s3595_s1 + $0xb4] ss:$8 sps:$4 sm:$0xff]   ;;  %vm471_vm4 = vsmask.f32 7424 }
  0x23   : > { %540 = vmatprep.subr.bf16.mxu0 %v2739_v9  ;;  %625 = vmatprep.subr.bf16.mxu1 %v2741_v10  ;;  %v439_v19 = vpack.c.bf16 %v438_v16, %v437_v15  ;;  %vm3117_vm2 = vmand %vm449_vm0, %vm450_vm1  ;;  %v2751_v33 = vld [vmem:[%s3595_s1 + $0xb0] ss:$8 sps:$4 sm:$0xff]   ;;  %v2756_v34 = vld [vmem:[%s3595_s1 + $0xa4] ss:$8 sps:$4 sm:$0xff]   ;;  %vm667_vm5 = vcmask 1046528   ;;  %v763_v16 = vlaneseq  ;;  %vm864_vm6 = vcmask 64512  }
  0x24   : > { %v2754_v37 = vld [vmem:[%s3595_s1 + $0xa0] ss:$8 sps:$4 sm:$0xff]   ;;  %v2759_v38 = vld [vmem:[%s3595_s1 + $0x94] ss:$8 sps:$4 sm:$0xff]   ;;  %v2757_v39 = vld [vmem:[%s3595_s1 + $0x90] ss:$8 sps:$4 sm:$0xff]  }
  0x25   : > { %v441_v21 = vshrl.u32 %v439_v19, 16  ;;  %v444_v22 = vshll.u32 %v439_v19, 16  ;;  %v2762_v40 = vld [vmem:[%s3595_s1 + $0x84] ss:$8 sps:$4 sm:$0xff]   ;;  %v2760_v41 = vld [vmem:[%s3595_s1 + $0x80] ss:$8 sps:$4 sm:$0xff]  }
  0x26   : > { %541 = vmatpush1.bf16.msra.mxu0 %v2743_v11  ;;  %626 = vmatpush1.bf16.msra.mxu1 %v2744_v12  ;;  %v3155_v45 = vld [vmem:[%s3603_s9 + $0xf8] sm:$0xff]  ;;  %v3165_v47 = vld [vmem:[%s3603_s9 + $0xf0] sm:$0xff]  ;;  %v3178_v49 = vld [vmem:[%s3603_s9 + $0xe8] sm:$0xff]  ;;  %v764_v19 = vshrl.u32 %v763_v16, 7  ;;  %s2563_s15 = sshll.u32 %s3613_s18, 5 }
  0x27   : > { %542 = vmatprep.subr.bf16.mxu0 %v2745_v13  ;;  %627 = vmatprep.subr.bf16.mxu1 %v2747_v14  ;;  %v443_v23 = vrot.slane %v441_v21, 7  ;;  %v3160_v46 = vld [vmem:[%s3603_s9 + $0x78] sm:$0xff]  ;;  %v3171_v48 = vld [vmem:[%s3603_s9 + $0x70] sm:$0xff]  ;;  %v3185_v50 = vld [vmem:[%s3603_s9 + $0x68] sm:$0xff]  ;;  %s401_s20 = scalar_lea.vmem %s3605_s11, %s2563_s15 }
  0x28   : > { %v3197_v51 = vld [vmem:[%s3603_s9 + $0xe0] sm:$0xff]  ;;  %v3210_v53 = vld [vmem:[%s3603_s9 + $0xd8] sm:$0xff]  ;;  %v3224_v55 = vld [vmem:[%s3603_s9 + $0xd0] sm:$0xff] }
  0x29   : > { %v446_v25 = vor.u32 %v444_v22, %v443_v23  ;;  %v453_v26 = vsel %vm3117_vm2, %v443_v23, 0  ;;  %v3203_v52 = vld [vmem:[%s3603_s9 + $0x60] sm:$0xff]  ;;  %v3217_v54 = vld [vmem:[%s3603_s9 + $0x58] sm:$0xff]  ;;  %v3231_v56 = vld [vmem:[%s3603_s9 + $0x50] sm:$0xff]  ;;  %v3376_v22 = vsub.s32 0, %v764_v19 }
  0x2a   : > { %543 = vmatpush1.bf16.msra.mxu0 %v2749_v17  ;;  %628 = vmatpush1.bf16.msra.mxu1 %v2750_v18  ;;  %v480_v27 = vshll.u32 %v453_v26, 16  ;;  %v669_v43 = vrot.slane %v453_v26, 1  ;;  %v3238_v57 = vld [vmem:[%s3603_s9 + $0xc8] sm:$0xff]  ;;  %v3252_v59 = vld [vmem:[%s3603_s9 + $0xc0] sm:$0xff]  ;;  %v3266_v61 = vld [vmem:[%s3603_s9 + $0xb8] sm:$0xff] }
  0x2b   : > { %722 = vmatprep.subr.bf16.mxu0 %v2753_v20  ;;  %v452_v28 = vsel %vm3117_vm2, 0, %v446_v25  ;;  %2564 = vmatprep.subr.mxu1 %v3155_v45  ;;  %v3245_v58 = vld [vmem:[%s3603_s9 + $0x48] sm:$0xff]  ;;  %v3259_v60 = vld [vmem:[%s3603_s9 + $0x40] sm:$0xff]  ;;  %v3273_v62 = vld [vmem:[%s3603_s9 + $0x38] sm:$0xff] }
  0x2c   : > { %v473_v29 = vshrl.u32 %v452_v28, 16  ;;  %v475_v30 = vshll.u32 %v452_v28, 16  ;;  %v482_v32 = vrot.slane %v480_v27, 1  ;;  %v668_v42 = vrot.slane %v452_v28, 1  ;;  %v3280_v63 = vld [vmem:[%s3603_s9 + $0xb0] sm:$0xff]  ;;  %v3294_v1 = vld [vmem:[%s3603_s9 + $0xa8] sm:$0xff] }
  0x2d   : > { %2442 = vmatmul.mubr.msk.bf16.vlgmr.msra.gmra.mxu1 %vm524_vm3, %v452_v28  ;;  %v3301_v2 = vld [vmem:[%s3603_s9 + $0x28] sm:$0xff]  ;;  %v3308_v3 = vld [vmem:[%s3603_s9 + $0xa0] sm:$0xff]  ;;  %v3322_v5 = vld [vmem:[%s3603_s9 + $0x98] sm:$0xff]  ;;  %v3381_v27 = vsub.s32 1, %v764_v19 }
  0x2e   : > { %v477_v31 = vrot.slane %v475_v30, 1  ;;  %v670_v44 = vsel %vm667_vm5, %v668_v42, %v669_v43  ;;  %2565 = vmatpush3.msra.mxu1 %v3160_v46  ;;  %v3315_v4 = vld [vmem:[%s3603_s9 + $0x20] sm:$0xff]  ;;  %v3327_v6 = vld [vmem:[%s3603_s9 + $0x18] sm:$0xff]  ;;  %v3332_v7 = vld [vmem:[%s3603_s9 + $0x90] sm:$0xff] }
  0x2f   : > { %2566 = vmatprep.subr.mxu1 %v3165_v47  ;;  %v3339_v8 = vld [vmem:[%s3603_s9 + $0x10] sm:$0xff]  ;;  %v3346_v9 = vld [vmem:[%s3603_s9 + $0x88] sm:$0xff]  ;;  %v3360_v11 = vld [vmem:[%s3603_s9 + $0x80] sm:$0xff] }
  0x30   : > { %v478_v35 = vor.u32 %v477_v31, %v473_v29  ;;  %2567 = vmatpush3.msra.mxu1 %v3171_v48  ;;  %v3353_v10 = vld [vmem:[%s3603_s9 + $0x8] sm:$0xff]  ;;  %v3367_v12 = vld [vmem:[%s3603_s9] sm:$0xff] }
  0x31   : > { %2568 = vmatprep.subr.mxu1 %v3178_v49  ;;  %v761_v25 = vld [vmem:[%s3596_s2] sm:$0x3] }
  0x32   : > { %v483_v36 = vsel %vm471_vm4, %v478_v35, %v482_v32  ;;  %2569 = vmatpush3.msra.mxu1 %v3185_v50 }
  0x33   : > { %2433 = vmatmul.mubr.msk.bf16.vlgmr.msra.gmra.mxu0 %vm524_vm3, %v483_v36  ;;  %2570 = vmatprep.subr.mxu1 %v3197_v51 }
  0x34   : > { %723 = vmatpush1.bf16.msra.mxu0 %v2751_v33  ;;  %746 = vmatprep.mubr.bf16.mxu0 %v2966_v0  ;;  %v3287_v0 = vld [vmem:[%s3603_s9 + $0x30] sm:$0xff]  ;;  %v766_v33 = vrot.slane %v761_v25, %v3376_v22 }
  0x35   : > { %724 = vmatprep.subr.bf16.mxu0 %v2756_v34  ;;  %2571 = vmatpush3.msra.mxu1 %v3203_v52 }
  0x36   : > { %2572 = vmatprep.subr.mxu1 %v3210_v53 }
  0x37   : > { %2573 = vmatpush3.msra.mxu1 %v3217_v54 }
  0x38   : > { %725 = vmatpush1.bf16.msra.mxu0 %v2754_v37  ;;  %2574 = vmatprep.subr.mxu1 %v3224_v55  ;;  %v770_v37 = vrot.slane %v761_v25, %v3381_v27 }
  0x39   : > { %726 = vmatprep.subr.bf16.mxu0 %v2759_v38  ;;  %2575 = vmatpush3.msra.mxu1 %v3231_v56 }
  0x3a   : > { %2576 = vmatprep.subr.mxu1 %v3238_v57 }
  0x3b   : > { %2577 = vmatpush3.msra.mxu1 %v3245_v58 }
  0x3c   : > { %727 = vmatpush1.bf16.msra.mxu0 %v2757_v39  ;;  %2578 = vmatprep.subr.mxu1 %v3252_v59 }
  0x3d   : > { %728 = vmatprep.subr.bf16.mxu0 %v2762_v40  ;;  %2579 = vmatpush3.msra.mxu1 %v3259_v60 }
  0x3e   : > { %2580 = vmatprep.subr.mxu1 %v3266_v61 }
  0x3f   : > { %2581 = vmatpush3.msra.mxu1 %v3273_v62 }
  0x40   : > { %729 = vmatpush1.bf16.msra.mxu0 %v2760_v41  ;;  %2582 = vmatprep.subr.mxu1 %v3280_v63 }
  0x41   : > { %2599 = vmatprep.subr.mxu0 %v3155_v45  ;;  %2583 = vmatpush3.msra.mxu1 %v3287_v0 }
  0x42   : > { %2584 = vmatprep.subr.mxu1 %v3294_v1 }
  0x43   : > { %2459 = vmatmul.mubr.msk.bf16.vlgmr.msra.gmra.mxu0 %vm524_vm3, %v670_v44  ;;  %2585 = vmatpush3.msra.mxu1 %v3301_v2 }
  0x44   : > { %2600 = vmatpush3.msra.mxu0 %v3160_v46  ;;  %2586 = vmatprep.subr.mxu1 %v3308_v3 }
  0x45   : > { %2601 = vmatprep.subr.mxu0 %v3165_v47  ;;  %2587 = vmatpush3.msra.mxu1 %v3315_v4 }
  0x46   : > { %2602 = vmatpush3.msra.mxu0 %v3171_v48  ;;  %2588 = vmatprep.subr.mxu1 %v3322_v5 }
  0x47   : > { %2603 = vmatprep.subr.mxu0 %v3178_v49  ;;  %2589 = vmatpush3.msra.mxu1 %v3327_v6 }
  0x48   : > { %2604 = vmatpush3.msra.mxu0 %v3185_v50  ;;  %2590 = vmatprep.subr.mxu1 %v3332_v7 }
  0x49   : > { %2605 = vmatprep.subr.mxu0 %v3197_v51  ;;  %2591 = vmatpush3.msra.mxu1 %v3339_v8 }
  0x4a   : > { %2606 = vmatpush3.msra.mxu0 %v3203_v52  ;;  %2592 = vmatprep.subr.mxu1 %v3346_v9 }
  0x4b   : > { %2607 = vmatprep.subr.mxu0 %v3210_v53  ;;  %2593 = vmatpush3.msra.mxu1 %v3353_v10 }
  0x4c   : > { %2608 = vmatpush3.msra.mxu0 %v3217_v54  ;;  %2594 = vmatprep.subr.mxu1 %v3360_v11 }
  0x4d   : > { %2609 = vmatprep.subr.mxu0 %v3224_v55  ;;  %2595 = vmatpush3.msra.mxu1 %v3367_v12 }
  0x4e   : > { %2610 = vmatpush3.msra.mxu0 %v3231_v56 }
  0x4f   : > { %2611 = vmatprep.subr.mxu0 %v3238_v57 }
  0x50   : > { %2612 = vmatpush3.msra.mxu0 %v3245_v58 }
  0x51   : > { %2613 = vmatprep.subr.mxu0 %v3252_v59 }
  0x52   : > { %2614 = vmatpush3.msra.mxu0 %v3259_v60 }
  0x53   : > { %2615 = vmatprep.subr.mxu0 %v3266_v61 }
  0x54   : > { %2616 = vmatpush3.msra.mxu0 %v3273_v62 }
  0x55   : > { %2617 = vmatprep.subr.mxu0 %v3280_v63 }
  0x56   : > { %2618 = vmatpush3.msra.mxu0 %v3287_v0 }
  0x57   : > { %2619 = vmatprep.subr.mxu0 %v3294_v1 }
  0x58   : > { %2620 = vmatpush3.msra.mxu0 %v3301_v2 }
  0x59   : > { %2621 = vmatprep.subr.mxu0 %v3308_v3 }
  0x5a   : > { %2622 = vmatpush3.msra.mxu0 %v3315_v4 }
  0x5b   : > { %2623 = vmatprep.subr.mxu0 %v3322_v5 }
  0x5c   : > { %2624 = vmatpush3.msra.mxu0 %v3327_v6 }
  0x5d   : > { %2625 = vmatprep.subr.mxu0 %v3332_v7 }
  0x5e   : > { %2626 = vmatpush3.msra.mxu0 %v3339_v8 }
  0x5f   : > { %2627 = vmatprep.subr.mxu0 %v3346_v9 }
  0x60   : > { %2628 = vmatpush3.msra.mxu0 %v3353_v10 }
  0x61   : > { %2629 = vmatprep.subr.mxu0 %v3360_v11 }
  0x62   : > { %2630 = vmatpush3.msra.mxu0 %v3367_v12 }
  0xed   : > { %v647_v14 = vpop.f32.mrf.mxu1 }
  0xef   : > { %v649_v17 = vpop.f32.mrf.mxu1 }
  0xf1   : > { %v651_v20 = vpop.f32.mrf.mxu1 }
  0xf3   : > { %v562_v13 = vpop.f32.mrf.mxu0  ;;  %v653_v28 = vpop.f32.mrf.mxu1 }
  0xf4   : > { %v648_v26 = vadd.f32 %v647_v14, %v562_v13 }
  0xf5   : > { %v564_v15 = vpop.f32.mrf.mxu0 }
  0xf6   : > { %v650_v30 = vadd.f32 %v649_v17, %v564_v15 }
  0xf7   : > { %v566_v18 = vpop.f32.mrf.mxu0 }
  0xf8   : > { %v652_v31 = vadd.f32 %v651_v20, %v566_v18 }
  0xf9   : > { %v568_v21 = vpop.f32.mrf.mxu0 }
  0xfa   : > { %v654_v35 = vadd.f32 %v653_v28, %v568_v21 }
 0x103   : > { %v748_v23 = vpop.f32.mrf.mxu0 }
 0x104   : > { %v757_v32 = vadd.f32 %v748_v23, %v648_v26 }
 0x105   : > { %v750_v29 = vpop.f32.mrf.mxu0 }
 0x106   : > { %v758_v36 = vadd.f32 %v750_v29, %v650_v30  ;;  %v773_v40 = vadd.f32 %v766_v33, %v757_v32  ;;  %v3388_v30 = vld [vmem:[%s3604_s10 + $0x8] sm:$0xff]  ;;  %v3606_v32 = vmov 0.0  }
 0x107   : > { %v752_v34 = vpop.f32.mrf.mxu0  ;;  %898 = vmatprep.subr.mxu1 %v3388_v30 }
 0x108   : > { %v759_v38 = vadd.f32 %v752_v34, %v652_v31  ;;  %v774_v43 = vadd.f32 %v770_v37, %v758_v36  ;;  %v3394_v31 = vld [vmem:[%s3604_s10] sm:$0xff] }
 0x109   : > { %v754_v39 = vpop.f32.mrf.mxu0 }
 0x10a   : > { %v775_v41 = vadd.f32 %v766_v33, %v759_v38  ;;  %v760_v42 = vadd.f32 %v754_v39, %v654_v35 }
 0x10c   : > { %v779_v44 = vadd.f32 %v775_v41, %v773_v40  ;;  %v776_v13 = vadd.f32 %v770_v37, %v760_v42 }
 0x10e   : > { %v780_v14 = vrot.slane %v779_v44, 4  ;;  %v786_v16 = vadd.f32 %v776_v13, %v774_v43 }
 0x110   : > { %v781_v15 = vadd.f32 %v780_v14, %v779_v44  ;;  %v787_v17 = vrot.slane %v786_v16, 4 }
 0x112   : > { %v782_v18 = vrot.slane %v781_v15, 2  ;;  %v788_v19 = vadd.f32 %v787_v17, %v786_v16 }
 0x114   : > { %v783_v20 = vadd.f32 %v782_v18, %v781_v15  ;;  %v789_v23 = vrot.slane %v788_v19, 2 }
 0x116   : > { %v790_v21 = vadd.f32 %v789_v23, %v788_v19  ;;  %v784_v26 = vrot.slane %v783_v20, 1 }
 0x118   : > { %v791_v28 = vrot.slane %v790_v21, 1  ;;  %v785_v29 = vadd.f32 %v784_v26, %v783_v20 }
 0x11a   : > { %v792_v25 = vadd.f32 %v791_v28, %v790_v21 }
 0x11c   : > { %857 = vmatprep.mubr.f32.mxu1 %v792_v25 }
 0x11d   : > { %858 = vmatmul.mubr.f32.vlgmr.msra.gmra.mxu1 %v785_v29 }
 0x11e   : > { %899 = vmatpush1.msra.mxu1 %v3394_v31  ;;  %932 = vmatprep.mubr.f32.mxu1 %v3606_v32 }
 0x11f   : > { %1075 = vmatprep.subr.mxu1 %v3388_v30 }
 0x1dd   : > { %v2596_v33 = vpop.f32.mrf.mxu1 }
 0x1df   : > { %v2597_v34 = vpop.f32.mrf.mxu1 }
 0x1e0   : > { %v2598_v35 = vadd.f32 %v2597_v34, %v2596_v33 }
 0x1e2   : > { %v863_v36 = vmul.f32 0.001953125, %v2598_v35 }
 0x1e4   : > { %2460 = vmatmul.mubr.msk.f32.vlgmr.msra.gmra.mxu1 %vm864_vm6, %v863_v36 }
 0x1e5   : > { %1076 = vmatpush1.msra.mxu1 %v3394_v31  ;;  %1109 = vmatprep.mubr.f32.mxu1 %v3606_v32 }
 0x2a4   : > { %v934_v37 = vpop.f32.mrf.mxu1 }
 0x2a5   : > { %v942_v38 = vrot.slane %v934_v37, %v3376_v22  ;;  %v2763_v37 = vld [vmem:[#allocation2 + $0x70] ss:$8 sps:$4 sm:$0xff]  }
 0x2a6   : > { %v936_v39 = vpop.f32.mrf.mxu1 }
 0x2a7   : > { %v3403_v42 = vsub.f32 %v773_v40, %v942_v38  ;;  %v3405_v44 = vsub.f32 %v775_v41, %v942_v38  ;;  %v946_v14 = vrot.slane %v936_v39, %v3376_v22  ;;  %v2765_v38 = vld [vmem:[#allocation2 + $0x74] ss:$8 sps:$4 sm:$0xff]   ;;  %v2768_v39 = vld [vmem:[#allocation2 + $0x64] ss:$8 sps:$4 sm:$0xff]  }
 0x2a8   : > { %1640 = vmatprep.subr.bf16.mxu0 %v2765_v38 }
 0x2a9   : > { %v951_v16 = vmul.f32 %v3403_v42, %v3403_v42  ;;  %v953_v15 = vmul.f32 %v3405_v44, %v3405_v44  ;;  %v3412_v17 = vsub.f32 %v774_v43, %v946_v14  ;;  %v3414_v18 = vsub.f32 %v776_v13, %v946_v14  ;;  %v2771_v14 = vld [vmem:[#allocation2 + $0x174] ss:$8 sps:$4 sm:$0xff]  }
 0x2aa   : > { %1437 = vmatprep.subr.bf16.mxu1 %v2771_v14 }
 0x2ab   : > { %v955_v19 = vadd.f32 %v953_v15, %v951_v16  ;;  %v952_v20 = vmul.f32 %v3412_v17, %v3412_v17  ;;  %v954_v40 = vmul.f32 %v3414_v18, %v3414_v18  ;;  %v2766_v16 = vld [vmem:[#allocation2 + $0x60] ss:$8 sps:$4 sm:$0xff]   ;;  %v2774_v15 = vld [vmem:[#allocation2 + $0x54] ss:$8 sps:$4 sm:$0xff]  }
 0x2ad   : > { %v956_v41 = vrot.slane %v955_v19, 4  ;;  %v962_v23 = vadd.f32 %v954_v40, %v952_v20  ;;  %v2780_v20 = vld [vmem:[#allocation2 + $0x44] ss:$8 sps:$4 sm:$0xff]   ;;  %v2778_v40 = vld [vmem:[#allocation2 + $0x40] ss:$8 sps:$4 sm:$0xff]  }
 0x2af   : > { %v957_v21 = vadd.f32 %v956_v41, %v955_v19  ;;  %v963_v26 = vrot.slane %v962_v23, 4  ;;  %v2772_v19 = vld [vmem:[#allocation2 + $0x50] ss:$8 sps:$4 sm:$0xff]   ;;  %v2786_v41 = vld [vmem:[#allocation2 + $0x34] ss:$8 sps:$4 sm:$0xff]  }
 0x2b1   : > { %v958_v28 = vrot.slane %v957_v21, 2  ;;  %v964_v25 = vadd.f32 %v963_v26, %v962_v23  ;;  %v2784_v23 = vld [vmem:[#allocation2 + $0x30] ss:$8 sps:$4 sm:$0xff]   ;;  %v2790_v26 = vld [vmem:[#allocation2 + $0x20] ss:$8 sps:$4 sm:$0xff]  }
 0x2b3   : > { %v965_v29 = vrot.slane %v964_v25, 2  ;;  %v959_v33 = vadd.f32 %v958_v28, %v957_v21  ;;  %v2792_v21 = vld [vmem:[#allocation2 + $0x24] ss:$8 sps:$4 sm:$0xff]   ;;  %v2798_v28 = vld [vmem:[#allocation2 + $0x14] ss:$8 sps:$4 sm:$0xff]  }
 0x2b5   : > { %v966_v34 = vadd.f32 %v965_v29, %v964_v25  ;;  %v960_v43 = vrot.slane %v959_v33, 1  ;;  %v2796_v25 = vld [vmem:[#allocation2 + $0x10] ss:$8 sps:$4 sm:$0xff]   ;;  %v2804_v29 = vld [vmem:[#allocation2 + $0x4] ss:$8 sps:$4 sm:$0xff]  }
 0x2b7   : > { %v967_v35 = vrot.slane %v966_v34, 1  ;;  %v961_v36 = vadd.f32 %v960_v43, %v959_v33  ;;  %v2802_v33 = vld [vmem:[#allocation2] ss:$8 sps:$4 sm:$0xff]   ;;  %v2808_v43 = vld [vmem:[#allocation2 + $0xf0] ss:$8 sps:$4 sm:$0xff]  }
 0x2b9   : > { %v968_v13 = vadd.f32 %v967_v35, %v966_v34  ;;  %v2810_v34 = vld [vmem:[#allocation2 + $0xf4] ss:$8 sps:$4 sm:$0xff]   ;;  %v2816_v35 = vld [vmem:[#allocation2 + $0xe4] ss:$8 sps:$4 sm:$0xff]  }
 0x2bb   : > { %1033 = vmatprep.mubr.f32.mxu0 %v968_v13  ;;  %v2814_v13 = vld [vmem:[#allocation2 + $0xe0] ss:$8 sps:$4 sm:$0xff]  }
 0x2bc   : > { %1034 = vmatmul.mubr.f32.vlgmr.msra.gmra.mxu0 %v961_v36  ;;  %v2822_v36 = vld [vmem:[#allocation2 + $0xd4] ss:$8 sps:$4 sm:$0xff]  }
 0x2bd   : > { %1641 = vmatpush1.bf16.msra.mxu0 %v2763_v37  ;;  %v2820_v37 = vld [vmem:[#allocation2 + $0xd0] ss:$8 sps:$4 sm:$0xff]  }
 0x2be   : > { %1642 = vmatprep.subr.bf16.mxu0 %v2768_v39 }
 0x2c1   : > { %1643 = vmatpush1.bf16.msra.mxu0 %v2766_v16 }
 0x2c2   : > { %1644 = vmatprep.subr.bf16.mxu0 %v2774_v15 }
 0x2c5   : > { %1645 = vmatpush1.bf16.msra.mxu0 %v2772_v19  ;;  %v2769_v19 = vld [vmem:[#allocation2 + $0x170] ss:$8 sps:$4 sm:$0xff]  }
 0x2c6   : > { %1646 = vmatprep.subr.bf16.mxu0 %v2780_v20  ;;  %v2777_v20 = vld [vmem:[#allocation2 + $0x164] ss:$8 sps:$4 sm:$0xff]  }
 0x2c9   : > { %1647 = vmatpush1.bf16.msra.mxu0 %v2778_v40 }
 0x2ca   : > { %1648 = vmatprep.subr.bf16.mxu0 %v2786_v41  ;;  %v2775_v41 = vld [vmem:[#allocation2 + $0x160] ss:$8 sps:$4 sm:$0xff]  }
 0x2cd   : > { %1649 = vmatpush1.bf16.msra.mxu0 %v2784_v23  ;;  %v2783_v23 = vld [vmem:[#allocation2 + $0x154] ss:$8 sps:$4 sm:$0xff]  }
 0x2ce   : > { %1650 = vmatprep.subr.bf16.mxu0 %v2792_v21  ;;  %v2781_v21 = vld [vmem:[#allocation2 + $0x150] ss:$8 sps:$4 sm:$0xff]  }
 0x2d1   : > { %1651 = vmatpush1.bf16.msra.mxu0 %v2790_v26  ;;  %v2789_v26 = vld [vmem:[#allocation2 + $0x144] ss:$8 sps:$4 sm:$0xff]  }
 0x2d2   : > { %1652 = vmatprep.subr.bf16.mxu0 %v2798_v28  ;;  %v2787_v28 = vld [vmem:[#allocation2 + $0x140] ss:$8 sps:$4 sm:$0xff]  }
 0x2d5   : > { %1653 = vmatpush1.bf16.msra.mxu0 %v2796_v25  ;;  %v2795_v25 = vld [vmem:[#allocation2 + $0x134] ss:$8 sps:$4 sm:$0xff]  }
 0x2d6   : > { %1654 = vmatprep.subr.bf16.mxu0 %v2804_v29  ;;  %v2793_v29 = vld [vmem:[#allocation2 + $0x130] ss:$8 sps:$4 sm:$0xff]  }
 0x2d9   : > { %1655 = vmatpush1.bf16.msra.mxu0 %v2802_v33  ;;  %v2801_v33 = vld [vmem:[#allocation2 + $0x124] ss:$8 sps:$4 sm:$0xff]  }
 0x2da   : > { %1656 = vmatprep.subr.bf16.mxu0 %v2810_v34  ;;  %v2799_v34 = vld [vmem:[#allocation2 + $0x120] ss:$8 sps:$4 sm:$0xff]  }
 0x2dd   : > { %1657 = vmatpush2.bf16.msra.mxu0 %v2808_v43  ;;  %v2807_v43 = vld [vmem:[#allocation2 + $0x114] ss:$8 sps:$4 sm:$0xff]  }
 0x2de   : > { %1658 = vmatprep.subr.bf16.mxu0 %v2816_v35  ;;  %v2805_v35 = vld [vmem:[#allocation2 + $0x110] ss:$8 sps:$4 sm:$0xff]  }
 0x2e1   : > { %1659 = vmatpush2.bf16.msra.mxu0 %v2814_v13  ;;  %v2813_v13 = vld [vmem:[#allocation2 + $0x104] ss:$8 sps:$4 sm:$0xff]  }
 0x2e2   : > { %1660 = vmatprep.subr.bf16.mxu0 %v2822_v36  ;;  %v2811_v36 = vld [vmem:[#allocation2 + $0x100] ss:$8 sps:$4 sm:$0xff]  }
 0x2e5   : > { %1661 = vmatpush2.bf16.msra.mxu0 %v2820_v37  ;;  %v2819_v37 = vld [vmem:[#allocation2 + $0x1f4] ss:$8 sps:$4 sm:$0xff]  }
 0x37c   : > { %v2631_v38 = vpop.f32.mrf.mxu0 }
 0x37e   : > { %v2632_v39 = vpop.f32.mrf.mxu0 }
 0x37f   : > { %v2633_v14 = vadd.f32 %v2632_v39, %v2631_v38  ;;  %v2817_v38 = vld [vmem:[#allocation2 + $0x1f0] ss:$8 sps:$4 sm:$0xff]   ;;  %v2825_v39 = vld [vmem:[#allocation2 + $0x1e4] ss:$8 sps:$4 sm:$0xff]  }
 0x381   : > { %v1039_v16 = vmul.f32 0.001953125, %v2633_v14  ;;  %v2823_v14 = vld [vmem:[#allocation2 + $0x1e0] ss:$8 sps:$4 sm:$0xff]  }
 0x383   : > { %v1040_v15 = vadd.f32 1e-05, %v1039_v16  ;;  %v2828_v16 = vld [vmem:[#allocation2 + $0xc4] ss:$8 sps:$4 sm:$0xff]  }
 0x384   : > { %1662 = vmatprep.subr.bf16.mxu0 %v2828_v16  ;;  %v2861_v16 = vld [vmem:[#allocation2 + $0x274] ss:$8 sps:$4 sm:$0xff]  }
 0x385   : > { %2907 = vrsqrt.f32 %v1040_v15  ;;  %v2826_v15 = vld [vmem:[#allocation2 + $0xc0] ss:$8 sps:$4 sm:$0xff]  }
 0x386   : > { %1663 = vmatpush2.bf16.msra.mxu0 %v2826_v15  ;;  %v777_v15 = vld [vmem:[%s3597_s3] sm:$0x3] }
 0x392   : > { %v2908_v40 = vpop.eup %2907 }
 0x393   : > { %2461 = vmatmul.mubr.msk.f32.vlgmr.msra.gmra.mxu1 %vm864_vm6, %v2908_v40  ;;  %v2834_v40 = vld [vmem:[#allocation2 + $0xb4] ss:$8 sps:$4 sm:$0xff]  }
 0x394   : > { %1438 = vmatpush1.bf16.msra.mxu1 %v2769_v19  ;;  %v2831_v19 = vld [vmem:[#allocation2 + $0x1d4] ss:$8 sps:$4 sm:$0xff]   ;;  %1664 = vmatprep.subr.bf16.mxu0 %v2834_v40 }
 0x395   : > { %1439 = vmatprep.subr.bf16.mxu1 %v2777_v20  ;;  %v2829_v20 = vld [vmem:[#allocation2 + $0x1d0] ss:$8 sps:$4 sm:$0xff]  }
 0x398   : > { %1440 = vmatpush1.bf16.msra.mxu1 %v2775_v41  ;;  %v2832_v41 = vld [vmem:[#allocation2 + $0xb0] ss:$8 sps:$4 sm:$0xff]  }
 0x399   : > { %1441 = vmatprep.subr.bf16.mxu1 %v2783_v23  ;;  %v2837_v23 = vld [vmem:[#allocation2 + $0x1c4] ss:$8 sps:$4 sm:$0xff]   ;;  %1665 = vmatpush2.bf16.msra.mxu0 %v2832_v41 }
 0x39c   : > { %1442 = vmatpush1.bf16.msra.mxu1 %v2781_v21  ;;  %v2835_v21 = vld [vmem:[#allocation2 + $0x1c0] ss:$8 sps:$4 sm:$0xff]  }
 0x39d   : > { %1443 = vmatprep.subr.bf16.mxu1 %v2789_v26  ;;  %v2840_v26 = vld [vmem:[#allocation2 + $0xa4] ss:$8 sps:$4 sm:$0xff]  }
 0x39e   : > { %1666 = vmatprep.subr.bf16.mxu0 %v2840_v26 }
 0x3a0   : > { %1444 = vmatpush1.bf16.msra.mxu1 %v2787_v28  ;;  %v2838_v28 = vld [vmem:[#allocation2 + $0xa0] ss:$8 sps:$4 sm:$0xff]  }
 0x3a1   : > { %1445 = vmatprep.subr.bf16.mxu1 %v2795_v25  ;;  %v2843_v25 = vld [vmem:[#allocation2 + $0x1b4] ss:$8 sps:$4 sm:$0xff]   ;;  %1667 = vmatpush2.bf16.msra.mxu0 %v2838_v28 }
 0x3a4   : > { %1446 = vmatpush1.bf16.msra.mxu1 %v2793_v29  ;;  %v2841_v29 = vld [vmem:[#allocation2 + $0x1b0] ss:$8 sps:$4 sm:$0xff]  }
 0x3a5   : > { %1447 = vmatprep.subr.bf16.mxu1 %v2801_v33  ;;  %v2844_v33 = vld [vmem:[#allocation2 + $0x90] ss:$8 sps:$4 sm:$0xff]  }
 0x3a8   : > { %1448 = vmatpush1.bf16.msra.mxu1 %v2799_v34  ;;  %v2846_v34 = vld [vmem:[#allocation2 + $0x94] ss:$8 sps:$4 sm:$0xff]  }
 0x3a9   : > { %1449 = vmatprep.subr.bf16.mxu1 %v2807_v43  ;;  %v2847_v43 = vld [vmem:[#allocation2 + $0x1a0] ss:$8 sps:$4 sm:$0xff]   ;;  %1668 = vmatprep.subr.bf16.mxu0 %v2846_v34 }
 0x3aa   : > { %1669 = vmatpush2.bf16.msra.mxu0 %v2844_v33 }
 0x3ac   : > { %1450 = vmatpush1.bf16.msra.mxu1 %v2805_v35  ;;  %v2849_v35 = vld [vmem:[#allocation2 + $0x1a4] ss:$8 sps:$4 sm:$0xff]  }
 0x3ad   : > { %1451 = vmatprep.subr.bf16.mxu1 %v2813_v13  ;;  %v2852_v13 = vld [vmem:[#allocation2 + $0x84] ss:$8 sps:$4 sm:$0xff]  }
 0x3ae   : > { %1670 = vmatprep.subr.bf16.mxu0 %v2852_v13 }
 0x3b0   : > { %1452 = vmatpush1.bf16.msra.mxu1 %v2811_v36  ;;  %v2855_v36 = vld [vmem:[#allocation2 + $0x194] ss:$8 sps:$4 sm:$0xff]  }
 0x3b1   : > { %1453 = vmatprep.subr.bf16.mxu1 %v2819_v37  ;;  %v2850_v37 = vld [vmem:[#allocation2 + $0x80] ss:$8 sps:$4 sm:$0xff]  }
 0x3b2   : > { %1671 = vmatpush2.bf16.msra.mxu0 %v2850_v37 }
 0x3b3   : > { %2634 = vmatprep.subr.mxu0 %v3155_v45  ;;  %v1132_v45 = vrot.slane %v777_v15, %v3376_v22 }
 0x3b4   : > { %1454 = vmatpush2.bf16.msra.mxu1 %v2817_v38  ;;  %v2853_v38 = vld [vmem:[#allocation2 + $0x190] ss:$8 sps:$4 sm:$0xff]  }
 0x3b5   : > { %1455 = vmatprep.subr.bf16.mxu1 %v2825_v39  ;;  %v2858_v39 = vld [vmem:[#allocation2 + $0x184] ss:$8 sps:$4 sm:$0xff]  }
 0x3b8   : > { %1456 = vmatpush2.bf16.msra.mxu1 %v2823_v14  ;;  %v2856_v14 = vld [vmem:[#allocation2 + $0x180] ss:$8 sps:$4 sm:$0xff]  }
 0x3b9   : > { %1457 = vmatprep.subr.bf16.mxu1 %v2831_v19  ;;  %v778_v19 = vld [vmem:[%s3598_s4] sm:$0x3] }
 0x3ba   : > { %v1147_v41 = vrot.slane %v778_v19, %v3376_v22 }
 0x3bc   : > { %1458 = vmatpush2.bf16.msra.mxu1 %v2829_v20 }
 0x3bd   : > { %1459 = vmatprep.subr.bf16.mxu1 %v2837_v23 }
 0x3c0   : > { %1460 = vmatpush2.bf16.msra.mxu1 %v2835_v21 }
 0x3c1   : > { %1461 = vmatprep.subr.bf16.mxu1 %v2843_v25  ;;  %v1136_v25 = vrot.slane %v777_v15, %v3381_v27 }
 0x3c4   : > { %1462 = vmatpush2.bf16.msra.mxu1 %v2841_v29  ;;  %v1151_v29 = vrot.slane %v778_v19, %v3381_v27 }
 0x3c5   : > { %1463 = vmatprep.subr.bf16.mxu1 %v2849_v35 }
 0x3c8   : > { %1464 = vmatpush2.bf16.msra.mxu1 %v2847_v43 }
 0x3c9   : > { %1465 = vmatprep.subr.bf16.mxu1 %v2855_v36 }
 0x3cc   : > { %1466 = vmatpush2.bf16.msra.mxu1 %v2853_v38 }
 0x3cd   : > { %1467 = vmatprep.subr.bf16.mxu1 %v2858_v39 }
 0x3d0   : > { %1468 = vmatpush2.bf16.msra.mxu1 %v2856_v14 }
 0x3d1   : > { %1888 = vmatprep.subr.bf16.mxu1 %v2861_v16 }
 0x453   : > { %v1111_v20 = vpop.f32.mrf.mxu1 }
 0x454   : > { %v1119_v40 = vrot.slane %v1111_v20, %v3376_v22 }
 0x455   : > { %v1113_v23 = vpop.f32.mrf.mxu1 }
 0x456   : > { %v1124_v21 = vmul.f32 %v1119_v40, %v3403_v42  ;;  %v1126_v26 = vmul.f32 %v1119_v40, %v3405_v44  ;;  %v1123_v28 = vrot.slane %v1113_v23, %v3376_v22 }
 0x458   : > { %v1139_v33 = vmul.f32 %v1132_v45, %v1124_v21  ;;  %v1141_v34 = vmul.f32 %v1132_v45, %v1126_v26  ;;  %v1125_v43 = vmul.f32 %v1123_v28, %v3412_v17  ;;  %v1127_v35 = vmul.f32 %v1123_v28, %v3414_v18 }
 0x45a   : > { %v1154_v13 = vadd.f32 %v1147_v41, %v1139_v33  ;;  %v1156_v36 = vadd.f32 %v1147_v41, %v1141_v34  ;;  %v1140_v37 = vmul.f32 %v1136_v25, %v1125_v43  ;;  %v1142_v38 = vmul.f32 %v1136_v25, %v1127_v35 }
 0x45c   : > { %v1158_v39 = vmax.f32 %v1154_v13, 0.0  ;;  %v1160_v42 = vmax.f32 %v1156_v36, 0.0  ;;  %v1155_v14 = vadd.f32 %v1151_v29, %v1140_v37  ;;  %v1157_v44 = vadd.f32 %v1151_v29, %v1142_v38 }
 0x45e   : > { %v1162_v16 = vpack.c.bf16 %v1160_v42, %v1158_v39  ;;  %v1159_v20 = vmax.f32 %v1155_v14, 0.0  ;;  %v1161_v40 = vmax.f32 %v1157_v44, 0.0 }
 0x460   : > { %v1163_v15 = vpack.c.bf16 %v1161_v40, %v1159_v20  ;;  %v1165_v23 = vshrl.u32 %v1162_v16, 16  ;;  %v1168_v45 = vshll.u32 %v1162_v16, 16  ;;  %v2859_v20 = vld [vmem:[#allocation2 + $0x270] ss:$8 sps:$4 sm:$0xff]  }
 0x462   : > { %v1172_v19 = vshrl.u32 %v1163_v15, 16  ;;  %v1167_v21 = vrot.slane %v1165_v23, 7  ;;  %v1175_v17 = vshll.u32 %v1163_v15, 16 }
 0x464   : > { %v1174_v26 = vrot.slane %v1172_v19, 7  ;;  %v1170_v32 = vor.u32 %v1168_v45, %v1167_v21  ;;  %v1184_v18 = vsel %vm3117_vm2, %v1167_v21, 0  ;;  %v2864_v19 = vld [vmem:[#allocation2 + $0x264] ss:$8 sps:$4 sm:$0xff]   ;;  %v2880_v45 = vld [vmem:[#allocation2 + $0x200] ss:$8 sps:$4 sm:$0xff]  }
 0x465   : > { %v1721_v43 = vrot.slane %v1184_v18, 1  ;;  %v1259_v38 = vshll.u32 %v1184_v18, 16  ;;  %v2882_v21 = vld [vmem:[#allocation2 + $0x204] ss:$8 sps:$4 sm:$0xff]  }
 0x466   : > { %v1177_v41 = vor.u32 %v1175_v17, %v1174_v26  ;;  %v1182_v28 = vsel %vm3117_vm2, 0, %v1170_v32  ;;  %v1185_v25 = vsel %vm3117_vm2, %v1174_v26, 0  ;;  %v2885_v26 = vld [vmem:[#allocation2 + $0x2f4] ss:$8 sps:$4 sm:$0xff]   ;;  %v2883_v17 = vld [vmem:[#allocation2 + $0x2f0] ss:$8 sps:$4 sm:$0xff]  }
 0x467   : > { %v1254_v29 = vshll.u32 %v1182_v28, 16  ;;  %v1720_v33 = vrot.slane %v1182_v28, 1  ;;  %v1271_v36 = vshll.u32 %v1185_v25, 16  ;;  %v1252_v37 = vshrl.u32 %v1182_v28, 16  ;;  %v2888_v18 = vld [vmem:[#allocation2 + $0x2e4] ss:$8 sps:$4 sm:$0xff]  }
 0x468   : > { %v1183_v34 = vsel %vm3117_vm2, 0, %v1177_v41  ;;  %v1261_v40 = vrot.slane %v1259_v38, 1  ;;  %v1724_v23 = vrot.slane %v1185_v25, 1  ;;  %v2886_v41 = vld [vmem:[#allocation2 + $0x2e0] ss:$8 sps:$4 sm:$0xff]  }
 0x469   : > { %v1266_v35 = vshll.u32 %v1183_v34, 16  ;;  %1672 = vmatprep.mubr.bf16.mxu0 %v1183_v34  ;;  %v1256_v13 = vrot.slane %v1254_v29, 1  ;;  %v3447_v39 = vsel %vm667_vm5, %v1720_v33, %v1721_v43  ;;  %v1264_v32 = vshrl.u32 %v1183_v34, 16  ;;  %v2889_v25 = vld [vmem:[#allocation2 + $0x2d0] ss:$8 sps:$4 sm:$0xff]  }
 0x46a   : > { %1673 = vmatmul.mubr.bf16.vlgmr.msra.gmra.mxu0 %v1182_v28  ;;  %v1273_v44 = vrot.slane %v1271_v36, 1  ;;  %v1723_v16 = vrot.slane %v1183_v34, 1  ;;  %v2891_v28 = vld [vmem:[#allocation2 + $0x2d4] ss:$8 sps:$4 sm:$0xff]   ;;  %v2894_v29 = vld [vmem:[#allocation2 + $0x2c4] ss:$8 sps:$4 sm:$0xff]  }
 0x46b   : > { %v1268_v42 = vrot.slane %v1266_v35, 1  ;;  %2635 = vmatpush3.msra.mxu0 %v3160_v46  ;;  %v1257_v14 = vor.u32 %v1256_v13, %v1252_v37  ;;  %v2892_v33 = vld [vmem:[#allocation2 + $0x2c0] ss:$8 sps:$4 sm:$0xff]   ;;  %v2897_v34 = vld [vmem:[#allocation2 + $0x2b4] ss:$8 sps:$4 sm:$0xff]  }
 0x46c   : > { %2636 = vmatprep.subr.mxu0 %v3165_v47  ;;  %v1725_v47 = vsel %vm667_vm5, %v1723_v16, %v1724_v23  ;;  %v2895_v43 = vld [vmem:[#allocation2 + $0x2b0] ss:$8 sps:$4 sm:$0xff]   ;;  %v2900_v35 = vld [vmem:[#allocation2 + $0x2a4] ss:$8 sps:$4 sm:$0xff]   ;;  %v2898_v13 = vld [vmem:[#allocation2 + $0x2a0] ss:$8 sps:$4 sm:$0xff]  }
 0x46d   : > { %v1269_v24 = vor.u32 %v1268_v42, %v1264_v32  ;;  %2637 = vmatpush3.msra.mxu0 %v3171_v48  ;;  %v1262_v46 = vsel %vm471_vm4, %v1257_v14, %v1261_v40  ;;  %v2862_v48 = vld [vmem:[#allocation2 + $0x260] ss:$8 sps:$4 sm:$0xff]   ;;  %v2903_v36 = vld [vmem:[#allocation2 + $0x294] ss:$8 sps:$4 sm:$0xff]   ;;  %v2901_v37 = vld [vmem:[#allocation2 + $0x290] ss:$8 sps:$4 sm:$0xff]  }
 0x46e   : > { %2638 = vmatprep.subr.mxu0 %v3178_v49  ;;  %v2867_v49 = vld [vmem:[#allocation2 + $0x254] ss:$8 sps:$4 sm:$0xff]   ;;  %v2906_v38 = vld [vmem:[#allocation2 + $0x284] ss:$8 sps:$4 sm:$0xff]   ;;  %v2904_v32 = vld [vmem:[#allocation2 + $0x280] ss:$8 sps:$4 sm:$0xff]  }
 0x46f   : > { %v1274_v15 = vsel %vm471_vm4, %v1269_v24, %v1273_v44  ;;  %2639 = vmatpush3.msra.mxu0 %v3185_v50  ;;  %v2865_v50 = vld [vmem:[#allocation2 + $0x250] ss:$8 sps:$4 sm:$0xff]   ;;  %v3611_v42 = vmov 0.0  }
 0x470   : > { %1469 = vmatprep.mubr.bf16.mxu1 %v1274_v15  ;;  %2640 = vmatprep.subr.mxu0 %v3197_v51  ;;  %v2870_v51 = vld [vmem:[#allocation2 + $0x244] ss:$8 sps:$4 sm:$0xff]  }
 0x471   : > { %1470 = vmatmul.mubr.bf16.vlgmr.msra.gmra.mxu1 %v1262_v46  ;;  %2641 = vmatpush3.msra.mxu0 %v3203_v52  ;;  %v2868_v52 = vld [vmem:[#allocation2 + $0x240] ss:$8 sps:$4 sm:$0xff]  }
 0x472   : > { %1889 = vmatpush1.bf16.msra.mxu1 %v2859_v20  ;;  %1920 = vmatprep.mubr.bf16.mxu1 %v1725_v47 }
 0x473   : > { %1890 = vmatprep.subr.bf16.mxu1 %v2864_v19  ;;  %2642 = vmatprep.subr.mxu0 %v3210_v53  ;;  %v2873_v53 = vld [vmem:[#allocation2 + $0x234] ss:$8 sps:$4 sm:$0xff]   ;;  %v1935_v19 = vld [vmem:[%s3600_s6] sm:$0x3] }
 0x474   : > { %2643 = vmatpush3.msra.mxu0 %v3217_v54  ;;  %v2871_v54 = vld [vmem:[#allocation2 + $0x230] ss:$8 sps:$4 sm:$0xff]  }
 0x475   : > { %2644 = vmatprep.subr.mxu0 %v3224_v55  ;;  %v2876_v55 = vld [vmem:[#allocation2 + $0x224] ss:$8 sps:$4 sm:$0xff]  }
 0x476   : > { %1891 = vmatpush1.bf16.msra.mxu1 %v2862_v48  ;;  %2645 = vmatpush3.msra.mxu0 %v3231_v56  ;;  %v2874_v56 = vld [vmem:[#allocation2 + $0x220] ss:$8 sps:$4 sm:$0xff]  }
 0x477   : > { %1892 = vmatprep.subr.bf16.mxu1 %v2867_v49  ;;  %2646 = vmatprep.subr.mxu0 %v3238_v57  ;;  %v2879_v57 = vld [vmem:[#allocation2 + $0x214] ss:$8 sps:$4 sm:$0xff]   ;;  %v1940_v49 = vrot.slane %v1935_v19, %v3376_v22 }
 0x478   : > { %2647 = vmatpush3.msra.mxu0 %v3245_v58  ;;  %v2877_v58 = vld [vmem:[#allocation2 + $0x210] ss:$8 sps:$4 sm:$0xff]  }
 0x479   : > { %2648 = vmatprep.subr.mxu0 %v3252_v59 }
 0x47a   : > { %1893 = vmatpush1.bf16.msra.mxu1 %v2865_v50  ;;  %2649 = vmatpush3.msra.mxu0 %v3259_v60 }
 0x47b   : > { %1894 = vmatprep.subr.bf16.mxu1 %v2870_v51  ;;  %2650 = vmatprep.subr.mxu0 %v3266_v61 }
 0x47c   : > { %2651 = vmatpush3.msra.mxu0 %v3273_v62 }
 0x47d   : > { %2652 = vmatprep.subr.mxu0 %v3280_v63 }
 0x47e   : > { %1895 = vmatpush1.bf16.msra.mxu1 %v2868_v52  ;;  %2653 = vmatpush3.msra.mxu0 %v3287_v0 }
 0x47f   : > { %1896 = vmatprep.subr.bf16.mxu1 %v2873_v53  ;;  %2654 = vmatprep.subr.mxu0 %v3294_v1 }
 0x480   : > { %2655 = vmatpush3.msra.mxu0 %v3301_v2 }
 0x481   : > { %2656 = vmatprep.subr.mxu0 %v3308_v3 }
 0x482   : > { %1897 = vmatpush1.bf16.msra.mxu1 %v2871_v54  ;;  %2657 = vmatpush3.msra.mxu0 %v3315_v4  ;;  %v1944_v54 = vrot.slane %v1935_v19, %v3381_v27  ;;  %v2918_v19 = vld [vmem:[%s3603_s9 + $0x60] sm:$0xff] }
 0x483   : > { %1898 = vmatprep.subr.bf16.mxu1 %v2876_v55  ;;  %2658 = vmatprep.subr.mxu0 %v3322_v5 }
 0x484   : > { %2659 = vmatpush3.msra.mxu0 %v3327_v6 }
 0x485   : > { %2660 = vmatprep.subr.mxu0 %v3332_v7 }
 0x486   : > { %1899 = vmatpush1.bf16.msra.mxu1 %v2874_v56  ;;  %2661 = vmatpush3.msra.mxu0 %v3339_v8 }
 0x487   : > { %1900 = vmatprep.subr.bf16.mxu1 %v2879_v57  ;;  %2662 = vmatprep.subr.mxu0 %v3346_v9 }
 0x488   : > { %2663 = vmatpush3.msra.mxu0 %v3353_v10 }
 0x489   : > { %2664 = vmatprep.subr.mxu0 %v3360_v11 }
 0x48a   : > { %1901 = vmatpush1.bf16.msra.mxu1 %v2877_v58  ;;  %2665 = vmatpush3.msra.mxu0 %v3367_v12 }
 0x48b   : > { %1902 = vmatprep.subr.bf16.mxu1 %v2882_v21  ;;  %2071 = vmatprep.subr.mxu0 %v3388_v30 }
 0x48e   : > { %1903 = vmatpush1.bf16.msra.mxu1 %v2880_v45 }
 0x48f   : > { %1904 = vmatprep.subr.bf16.mxu1 %v2885_v26 }
 0x492   : > { %1905 = vmatpush2.bf16.msra.mxu1 %v2883_v17 }
 0x493   : > { %1906 = vmatprep.subr.bf16.mxu1 %v2888_v18 }
 0x496   : > { %1907 = vmatpush2.bf16.msra.mxu1 %v2886_v41 }
 0x497   : > { %1908 = vmatprep.subr.bf16.mxu1 %v2891_v28 }
 0x49a   : > { %1909 = vmatpush2.bf16.msra.mxu1 %v2889_v25 }
 0x49b   : > { %1910 = vmatprep.subr.bf16.mxu1 %v2894_v29 }
 0x49e   : > { %1911 = vmatpush2.bf16.msra.mxu1 %v2892_v33 }
 0x49f   : > { %1912 = vmatprep.subr.bf16.mxu1 %v2897_v34 }
 0x4a2   : > { %1913 = vmatpush2.bf16.msra.mxu1 %v2895_v43 }
 0x4a3   : > { %1914 = vmatprep.subr.bf16.mxu1 %v2900_v35 }
 0x4a6   : > { %1915 = vmatpush2.bf16.msra.mxu1 %v2898_v13 }
 0x4a7   : > { %1916 = vmatprep.subr.bf16.mxu1 %v2903_v36 }
 0x4aa   : > { %1917 = vmatpush2.bf16.msra.mxu1 %v2901_v37 }
 0x4ab   : > { %1918 = vmatprep.subr.bf16.mxu1 %v2906_v38 }
 0x4ae   : > { %1919 = vmatpush2.bf16.msra.mxu1 %v2904_v32  ;;  %v2911_v32 = vld [vmem:[%s3603_s9 + $0xf8] sm:$0xff] }
 0x4af   : > { %2248 = vmatprep.subr.mxu1 %v3388_v30 }
 0x4b1   : > { %1921 = vmatmul.mubr.bf16.vlgmr.msra.gmra.mxu1 %v3447_v39 }
 0x4b2   : > { %2249 = vmatpush1.msra.mxu1 %v3394_v31  ;;  %2282 = vmatprep.mubr.f32.mxu1 %v3611_v42 }
 0x52a   : > { %v1674_v44 = vpop.f32.mrf.mxu0 }
 0x52c   : > { %v1676_v20 = vpop.f32.mrf.mxu0 }
 0x52e   : > { %v1678_v15 = vpop.f32.mrf.mxu0 }
 0x530   : > { %v1680_v50 = vpop.f32.mrf.mxu0 }
 0x531   : > { %v1471_v14 = vpop.f32.mrf.mxu1 }
 0x532   : > { %v1675_v46 = vadd.f32 %v1674_v44, %v1471_v14 }
 0x533   : > { %v1473_v24 = vpop.f32.mrf.mxu1 }
 0x534   : > { %v1677_v47 = vadd.f32 %v1676_v20, %v1473_v24  ;;  %v2912_v20 = vld [vmem:[%s3603_s9 + $0x78] sm:$0xff] }
 0x535   : > { %v1475_v16 = vpop.f32.mrf.mxu1 }
 0x536   : > { %v1679_v39 = vadd.f32 %v1678_v15, %v1475_v16  ;;  %v2916_v15 = vld [vmem:[%s3603_s9 + $0x68] sm:$0xff] }
 0x537   : > { %v1477_v40 = vpop.f32.mrf.mxu1 }
 0x538   : > { %v1681_v52 = vadd.f32 %v1680_v50, %v1477_v40  ;;  %v2915_v40 = vld [vmem:[%s3603_s9 + $0xe8] sm:$0xff] }
 0x571   : > { %v1922_v23 = vpop.f32.mrf.mxu1 }
 0x572   : > { %v1931_v48 = vadd.f32 %v1922_v23, %v1675_v46  ;;  %v2917_v23 = vld [vmem:[%s3603_s9 + $0xe0] sm:$0xff]  ;;  %v2919_v46 = vld [vmem:[%s3603_s9 + $0xd8] sm:$0xff] }
 0x573   : > { %v1924_v30 = vpop.f32.mrf.mxu1 }
 0x574   : > { %v1932_v53 = vadd.f32 %v1924_v30, %v1677_v47  ;;  %v3493_v57 = vadd.f32 %v1940_v49, %v1931_v48  ;;  %v2920_v30 = vld [vmem:[%s3603_s9 + $0x58] sm:$0xff]  ;;  %v2921_v47 = vld [vmem:[%s3603_s9 + $0xd0] sm:$0xff]  ;;  %v2923_v48 = vld [vmem:[%s3603_s9 + $0xc8] sm:$0xff] }
 0x575   : > { %v1926_v51 = vpop.f32.mrf.mxu1 }
 0x576   : > { %v1933_v55 = vadd.f32 %v1926_v51, %v1679_v39  ;;  %v3497_v45 = vadd.f32 %v1944_v54, %v1932_v53  ;;  %v2922_v39 = vld [vmem:[%s3603_s9 + $0x50] sm:$0xff] }
 0x577   : > { %v1928_v56 = vpop.f32.mrf.mxu1 }
 0x578   : > { %v3495_v58 = vadd.f32 %v1940_v49, %v1933_v55  ;;  %v1934_v21 = vadd.f32 %v1928_v56, %v1681_v52  ;;  %v2924_v49 = vld [vmem:[%s3603_s9 + $0x48] sm:$0xff] }
 0x57a   : > { %v1953_v26 = vadd.f32 %v3495_v58, %v3493_v57  ;;  %v3501_v17 = vadd.f32 %v1944_v54, %v1934_v21 }
 0x57c   : > { %v1954_v18 = vrot.slane %v1953_v26, 4  ;;  %v1960_v41 = vadd.f32 %v3501_v17, %v3497_v45 }
 0x57e   : > { %v1955_v28 = vadd.f32 %v1954_v18, %v1953_v26  ;;  %v1961_v25 = vrot.slane %v1960_v41, 4 }
 0x580   : > { %v1956_v29 = vrot.slane %v1955_v28, 2  ;;  %v1962_v33 = vadd.f32 %v1961_v25, %v1960_v41  ;;  %v1951_v41 = vld [vmem:[%s3601_s7] sm:$0x3] }
 0x582   : > { %v1957_v34 = vadd.f32 %v1956_v29, %v1955_v28  ;;  %v1963_v43 = vrot.slane %v1962_v33, 2  ;;  %v1952_v28 = vld [vmem:[%s3602_s8] sm:$0x3] }
 0x584   : > { %v1964_v35 = vadd.f32 %v1963_v43, %v1962_v33  ;;  %v1958_v13 = vrot.slane %v1957_v34, 1  ;;  %v2305_v33 = vrot.slane %v1951_v41, %v3376_v22 }
 0x586   : > { %v1965_v36 = vrot.slane %v1964_v35, 1  ;;  %v1959_v38 = vadd.f32 %v1958_v13, %v1957_v34  ;;  %v2320_v34 = vrot.slane %v1952_v28, %v3376_v22 }
 0x588   : > { %v1966_v37 = vadd.f32 %v1965_v36, %v1964_v35 }
 0x58a   : > { %2031 = vmatprep.mubr.f32.mxu0 %v1966_v37  ;;  %v2309_v37 = vrot.slane %v1951_v41, %v3381_v27 }
 0x58b   : > { %2032 = vmatmul.mubr.f32.vlgmr.msra.gmra.mxu0 %v1959_v38  ;;  %v2324_v38 = vrot.slane %v1952_v28, %v3381_v27 }
 0x58c   : > { %2072 = vmatpush1.msra.mxu0 %v3394_v31  ;;  %2105 = vmatprep.mubr.f32.mxu0 %v3611_v42  ;;  %v2913_v31 = vld [vmem:[%s3603_s9 + $0xf0] sm:$0xff] }
 0x58d   : > { %2669 = vmatprep.subr.mxu0 %v2911_v32  ;;  %v2914_v42 = vld [vmem:[%s3603_s9 + $0x70] sm:$0xff] }
 0x64b   : > { %v2666_v14 = vpop.f32.mrf.mxu0 }
 0x64d   : > { %v2667_v24 = vpop.f32.mrf.mxu0 }
 0x64e   : > { %v2668_v44 = vadd.f32 %v2667_v24, %v2666_v14 }
 0x650   : > { %v2037_v16 = vmul.f32 0.001953125, %v2668_v44 }
 0x652   : > { %2558 = vmatmul.mubr.msk.f32.vlgmr.msra.gmra.mxu0 %vm864_vm6, %v2037_v16 }
 0x653   : > { %2670 = vmatpush3.msra.mxu0 %v2912_v20 }
 0x654   : > { %2671 = vmatprep.subr.mxu0 %v2913_v31 }
 0x655   : > { %2672 = vmatpush3.msra.mxu0 %v2914_v42 }
 0x656   : > { %2673 = vmatprep.subr.mxu0 %v2915_v40 }
 0x657   : > { %2674 = vmatpush3.msra.mxu0 %v2916_v15 }
 0x658   : > { %2675 = vmatprep.subr.mxu0 %v2917_v23 }
 0x659   : > { %2676 = vmatpush3.msra.mxu0 %v2918_v19 }
 0x65a   : > { %2677 = vmatprep.subr.mxu0 %v2919_v46 }
 0x65b   : > { %2678 = vmatpush3.msra.mxu0 %v2920_v30 }
 0x65c   : > { %2679 = vmatprep.subr.mxu0 %v2921_v47 }
 0x65d   : > { %2680 = vmatpush3.msra.mxu0 %v2922_v39 }
 0x65e   : > { %2681 = vmatprep.subr.mxu0 %v2923_v48 }
 0x65f   : > { %2682 = vmatpush3.msra.mxu0 %v2924_v49 }
 0x660   : > { %2683 = vmatprep.subr.mxu0 %v3252_v59 }
 0x661   : > { %2684 = vmatpush3.msra.mxu0 %v3259_v60 }
 0x662   : > { %2685 = vmatprep.subr.mxu0 %v3266_v61 }
 0x663   : > { %2686 = vmatpush3.msra.mxu0 %v3273_v62 }
 0x664   : > { %2687 = vmatprep.subr.mxu0 %v3280_v63 }
 0x665   : > { %2688 = vmatpush3.msra.mxu0 %v3287_v0 }
 0x666   : > { %2689 = vmatprep.subr.mxu0 %v3294_v1 }
 0x667   : > { %2690 = vmatpush3.msra.mxu0 %v3301_v2 }
 0x668   : > { %2691 = vmatprep.subr.mxu0 %v3308_v3 }
 0x669   : > { %2692 = vmatpush3.msra.mxu0 %v3315_v4 }
 0x66a   : > { %2693 = vmatprep.subr.mxu0 %v3322_v5 }
 0x66b   : > { %2694 = vmatpush3.msra.mxu0 %v3327_v6 }
 0x66c   : > { %2695 = vmatprep.subr.mxu0 %v3332_v7 }
 0x66d   : > { %2696 = vmatpush3.msra.mxu0 %v3339_v8 }
 0x66e   : > { %2697 = vmatprep.subr.mxu0 %v3346_v9 }
 0x66f   : > { %2698 = vmatpush3.msra.mxu0 %v3353_v10 }
 0x670   : > { %2699 = vmatprep.subr.mxu0 %v3360_v11 }
 0x671   : > { %2700 = vmatpush3.msra.mxu0 %v3367_v12 }
 0x712   : > { %v2107_v59 = vpop.f32.mrf.mxu0 }
 0x713   : > { %v2115_v60 = vrot.slane %v2107_v59, %v3376_v22 }
 0x714   : > { %v2109_v61 = vpop.f32.mrf.mxu0 }
 0x715   : > { %v2120_v62 = vsub.f32 %v3493_v57, %v2115_v60  ;;  %v2122_v63 = vsub.f32 %v3495_v58, %v2115_v60  ;;  %v2119_v0 = vrot.slane %v2109_v61, %v3376_v22 }
 0x717   : > { %v2124_v1 = vmul.f32 %v2120_v62, %v2120_v62  ;;  %v2126_v2 = vmul.f32 %v2122_v63, %v2122_v63  ;;  %v2121_v3 = vsub.f32 %v3497_v45, %v2119_v0  ;;  %v2123_v4 = vsub.f32 %v3501_v17, %v2119_v0 }
 0x719   : > { %v2128_v5 = vadd.f32 %v2126_v2, %v2124_v1  ;;  %v2125_v6 = vmul.f32 %v2121_v3, %v2121_v3  ;;  %v2127_v7 = vmul.f32 %v2123_v4, %v2123_v4 }
 0x71b   : > { %v2129_v8 = vrot.slane %v2128_v5, 4  ;;  %v2135_v9 = vadd.f32 %v2127_v7, %v2125_v6 }
 0x71d   : > { %v2130_v10 = vadd.f32 %v2129_v8, %v2128_v5  ;;  %v2136_v11 = vrot.slane %v2135_v9, 4 }
 0x71f   : > { %v2131_v12 = vrot.slane %v2130_v10, 2  ;;  %v2137_v50 = vadd.f32 %v2136_v11, %v2135_v9 }
 0x721   : > { %v2138_v51 = vrot.slane %v2137_v50, 2  ;;  %v2132_v52 = vadd.f32 %v2131_v12, %v2130_v10 }
 0x723   : > { %v2139_v53 = vadd.f32 %v2138_v51, %v2137_v50  ;;  %v2133_v54 = vrot.slane %v2132_v52, 1 }
 0x725   : > { %v2140_v55 = vrot.slane %v2139_v53, 1  ;;  %v2134_v57 = vadd.f32 %v2133_v54, %v2132_v52 }
 0x727   : > { %v2141_v56 = vadd.f32 %v2140_v55, %v2139_v53 }
 0x729   : > { %2206 = vmatprep.mubr.f32.mxu0 %v2141_v56 }
 0x72a   : > { %2207 = vmatmul.mubr.f32.vlgmr.msra.gmra.mxu0 %v2134_v57 }
 0x7ea   : > { %v2701_v58 = vpop.f32.mrf.mxu0 }
 0x7ec   : > { %v2702_v21 = vpop.f32.mrf.mxu0 }
 0x7ed   : > { %v2703_v45 = vadd.f32 %v2702_v21, %v2701_v58 }
 0x7ef   : > { %v2212_v26 = vmul.f32 0.001953125, %v2703_v45 }
 0x7f1   : > { %v2213_v17 = vadd.f32 1e-05, %v2212_v26 }
 0x7f3   : > { %2909 = vrsqrt.f32 %v2213_v17 }
 0x800   : > { %v2910_v18 = vpop.eup %2909 }
 0x801   : > { %2559 = vmatmul.mubr.msk.f32.vlgmr.msra.gmra.mxu1 %vm864_vm6, %v2910_v18 }
 0x8c1   : > { %v2284_v25 = vpop.f32.mrf.mxu1 }
 0x8c2   : > { %v2292_v29 = vrot.slane %v2284_v25, %v3376_v22 }
 0x8c3   : > { %v2286_v43 = vpop.f32.mrf.mxu1 }
 0x8c4   : > { %v2297_v35 = vmul.f32 %v2292_v29, %v2120_v62  ;;  %v2299_v13 = vmul.f32 %v2292_v29, %v2122_v63  ;;  %v2296_v36 = vrot.slane %v2286_v43, %v3376_v22 }
 0x8c6   : > { %v2312_v32 = vmul.f32 %v2305_v33, %v2297_v35  ;;  %v2314_v14 = vmul.f32 %v2305_v33, %v2299_v13  ;;  %v2298_v24 = vmul.f32 %v2296_v36, %v2121_v3  ;;  %v2300_v44 = vmul.f32 %v2296_v36, %v2123_v4 }
 0x8c8   : > { %v2327_v16 = vadd.f32 %v2320_v34, %v2312_v32  ;;  %v2329_v20 = vadd.f32 %v2320_v34, %v2314_v14  ;;  %v2313_v31 = vmul.f32 %v2309_v37, %v2298_v24  ;;  %v2315_v42 = vmul.f32 %v2309_v37, %v2300_v44 }
 0x8ca   : > { %v2331_v40 = vmax.f32 %v2327_v16, 0.0  ;;  %v2333_v15 = vmax.f32 %v2329_v20, 0.0  ;;  %v2328_v22 = vadd.f32 %v2324_v38, %v2313_v31  ;;  %v2330_v23 = vadd.f32 %v2324_v38, %v2315_v42 }
 0x8cc   : > { %2335 = vst [vmem:[%s401_s20] sm:$0xff] %v2331_v40  ;;  %2337 = vst [vmem:[%s401_s20 + $0x10] sm:$0xff] %v2333_v15  ;;  %v2332_v27 = vmax.f32 %v2328_v22, 0.0  ;;  %v2334_v19 = vmax.f32 %v2330_v23, 0.0 }
 0x8ce   : > { %2336 = vst [vmem:[%s401_s20 + $0x8] sm:$0xff] %v2332_v27  ;;  %2338 = vst [vmem:[%s401_s20 + $0x18] sm:$0xff] %v2334_v19 }
 0x8cf PF: > { %s22_s17 = sadd.s32 1, %s2961_s17  }
 0x8d0   : > { %p19_p1 = scmp.ge.s32.totalorder %s22_s17, 4  }
 0x8d2   :  { %21 = sbr.rel (!%p19_p1) target bundleno = 1 (0x1), region = 103 }
 0x8d7   :  { %2360 = vsyncpa [#allocation3], 1 }
 0x8d8   :  { %2362 = vsyncpa [#allocation3 + $0x1], 1 }

</bundles_post_ra>
